<compile_context>
chip_gen: v7x
topology: tpu7x:2x2x1
jax: 0.10.0
libtpu: 0.0.40
codegen_flags: <defaults>
</compile_context>

<pallas_src>
import jax
import jax.numpy as jnp
from jax.experimental import pallas as pl
from jax.experimental.pallas import tpu as pltpu


MAX_ROWS_PER_STEP = 2048   # ~2K MXU rows / grid step; safe on v5e/v6e/v7x VMEM
OUT_PAD = 128              # fc3 outputs padded 9 -> 128 lanes (lane-dense store)


def _round_up(v, m):
    return ((v + m - 1) // m) * m


def _epilogue_dtype():
    """bf16 conv3 epilogue on chips with a bf16 VPU (v6e/v7x); f32 otherwise."""
    try:
        kind = jax.devices()[0].device_kind.lower()
    except Exception:
        return jnp.float32
    for tag in ("v2", "v3", "v4", "v5"):
        if tag in kind:
            return jnp.float32
    return jnp.bfloat16


# ---------------------------------------------------------------------------
# Fused kernel: conv1/2/3 (pointwise Conv1d == channel matmul) + streamed
# max-pool over the N axis + fc1/fc2/fc3 head in the finalize step.
# Grid = (B, N chunks); the N axis is a reduction carried by a running f32
# maximum held in VMEM scratch.
# ---------------------------------------------------------------------------
def _make_stn_kernel(epi_dtype):
    def kernel(x_ref, w1_ref, b1_ref, w2_ref, b2_ref, w3_ref, b3_ref,
               w4_ref, b4_ref, w5_ref, b5_ref, w6_ref, b6_ref,
               out_ref, acc_ref):
        ni = pl.program_id(1)

        @pl.when(ni == 0)
        def _():
            acc_ref[...] = jnp.full(acc_ref.shape, -jnp.inf, jnp.float32)

        x = x_ref[...]                                       # (Nt, Cp) bf16

        # conv1 -> bn1 -> relu (bf16 matmul, f32 accumulation + elementwise)
        h = jnp.dot(x, w1_ref[...],
                    preferred_element_type=jnp.float32) + b1_ref[...]
        h = jnp.maximum(h, 0.0)                              # (Nt, 64)

        # conv2 -> bn2 -> relu
        h = jnp.dot(h.astype(jnp.bfloat16), w2_ref[...],
                    preferred_element_type=jnp.float32) + b2_ref[...]
        h = jnp.maximum(h, 0.0)                              # (Nt, 128)

        # conv3 -> bn3 -> relu; epilogue in bf16 on v6e/v7x, f32 on v5e.
        h = jnp.dot(h.astype(jnp.bfloat16), w3_ref[...],
                    preferred_element_type=jnp.float32)
        h = jnp.maximum(h.astype(epi_dtype) + b3_ref[...], 0.0)   # (Nt, 1024)

        # Per-chunk max over points (leading-axis reduce), combined with a
        # running elementwise max across chunks in f32.
        chunk_max = jnp.max(h, axis=0, keepdims=True)        # (1, 1024)
        acc_ref[...] = jnp.maximum(acc_ref[...], chunk_max.astype(jnp.float32))

        # Finalize: fc1/fc2/fc3 head on the pooled features (M = 1 row).
        @pl.when(ni == pl.num_programs(1) - 1)
        def _():
            g = acc_ref[...].astype(jnp.bfloat16)            # (1, 1024)
            f = jnp.dot(g, w4_ref[...],
                        preferred_element_type=jnp.float32) + b4_ref[...]
            f = jnp.maximum(f, 0.0)                          # (1, 512)
            f = jnp.dot(f.astype(jnp.bfloat16), w5_ref[...],
                        preferred_element_type=jnp.float32) + b5_ref[...]
            f = jnp.maximum(f, 0.0)                          # (1, 256)
            out_ref[...] = jnp.dot(f.astype(jnp.bfloat16), w6_ref[...],
                                   preferred_element_type=jnp.float32) + b6_ref[...]

    return kernel


def _fold_bn(w, b, gamma, beta, mean, var, eps=1e-5):
    """Fold eval-mode BatchNorm1d into the preceding (out,in) weight + bias.

    Returns the (in, out) effective weight and (1, out) bias for `x @ W + b`.
    """
    scale = gamma / jnp.sqrt(var + eps)
    w_eff = (w * scale[:, None]).T
    b_eff = ((b - mean) * scale + beta)[None, :]
    return w_eff, b_eff


def _pick_points_tile(N, max_rows=MAX_ROWS_PER_STEP):
    """Smallest number of N chunks with <= max_rows points each (8-aligned)."""
    n_chunks = max(1, -(-N // max_rows))
    nt = _round_up(-(-N // n_chunks), 8)
    return nt, nt * n_chunks


@jax.jit
def stn3d_forward(x_ncl, params):
    """x_ncl: (B, C, N) float32, exactly the PyTorch Conv1d (NCL) input."""
    B, C, N = x_ncl.shape
    x = jnp.transpose(x_ncl, (0, 2, 1))                      # (B, N, C)
    epi_dtype = _epilogue_dtype()

    # Fold BN (eval mode) into conv/fc weights (plain-JAX glue).
    # TODO(synk): training-mode BatchNorm1d batch statistics are not reproduced.
    w1, b1 = _fold_bn(params["conv1_w"], params["conv1_b"], *params["bn1"])
    w2, b2 = _fold_bn(params["conv2_w"], params["conv2_b"], *params["bn2"])
    w3, b3 = _fold_bn(params["conv3_w"], params["conv3_b"], *params["bn3"])
    w4, b4 = _fold_bn(params["fc1_w"], params["fc1_b"], *params["bn4"])
    w5, b5 = _fold_bn(params["fc2_w"], params["fc2_b"], *params["bn5"])
    w6 = params["fc3_w"].T                                   # (256, 9)
    b6 = params["fc3_b"][None, :]

    # Fold the flattened 3x3 identity into the fc3 bias (no in-kernel constant).
    iden = jnp.array([1., 0., 0., 0., 1., 0., 0., 0., 1.], jnp.float32)
    b6 = b6 + iden[None, :]

    # Pad input channels (3 -> 8): sublane-aligned matmul K; the extra channels
    # hit zero rows of w1 so results are unchanged.
    Cp = _round_up(max(C, 8), 8)
    if Cp > C:
        x = jnp.pad(x, ((0, 0), (0, 0), (0, Cp - C)))
        w1 = jnp.pad(w1, ((0, Cp - C), (0, 0)))

    # Pad fc3 outputs 9 -> 128 so the final store is lane-dense.
    w6 = jnp.pad(w6, ((0, 0), (0, OUT_PAD - w6.shape[1])))
    b6 = jnp.pad(b6, ((0, 0), (0, OUT_PAD - b6.shape[1])))

    # bf16 weights (MXU), f32 biases; b3 matches the conv3 epilogue dtype.
    w1, w2, w3, w4, w5, w6 = (w.astype(jnp.bfloat16)
                              for w in (w1, w2, w3, w4, w5, w6))
    b3 = b3.astype(epi_dtype)

    # Points tiling; pad N by repeating the last point (does not change the
    # max because every padded row is a real point and ReLU precedes the max).
    Nt, N_pad = _pick_points_tile(N)
    if N_pad > N:
        tail = jnp.broadcast_to(x[:, N - 1:N, :], (B, N_pad - N, Cp))
        x = jnp.concatenate([x, tail], axis=1)
    x = x.astype(jnp.bfloat16)                               # halve input DMA bytes
    n_chunks = N_pad // Nt

    # Grid-invariant weights: constant index_map + single buffer (no per-step
    # re-staging, no double-buffer VMEM cost).
    def wspec(a):
        nd = a.ndim
        return pl.BlockSpec(a.shape, lambda bi, ni: (0,) * nd,
                            pipeline_mode=pl.Buffered(1))

    out_pad = pl.pallas_call(
        _make_stn_kernel(epi_dtype),
        out_shape=jax.ShapeDtypeStruct((B, 1, OUT_PAD), jnp.float32),
        grid=(B, n_chunks),
        in_specs=[
            # x chunk: leading batch dim squeezed -> kernel sees a 2-D (Nt, Cp)
            pl.BlockSpec((None, Nt, Cp), lambda bi, ni: (bi, ni, 0)),
            wspec(w1), wspec(b1), wspec(w2), wspec(b2), wspec(w3), wspec(b3),
            wspec(w4), wspec(b4), wspec(w5), wspec(b5), wspec(w6), wspec(b6),
        ],
        out_specs=pl.BlockSpec((None, 1, OUT_PAD), lambda bi, ni: (bi, 0, 0)),
        scratch_shapes=[pltpu.VMEM((1, 1024), jnp.float32)],
        compiler_params=pltpu.CompilerParams(
            dimension_semantics=("parallel", "arbitrary"),
            vmem_limit_bytes=32 * 1024 * 1024),
    )(x, w1, b1, w2, b2, w3, b3, w4, b4, w5, b5, w6, b6)

    return out_pad.reshape(B, OUT_PAD)[:, :9].reshape(B, 3, 3)


# ---------------------------------------------------------------------------
# Pure-JAX reference (f32) for a loose correctness check.
# ---------------------------------------------------------------------------
def _reference_forward(x_ncl, params, eps=1e-5):
    def bn_c(h, stats):   # h: (B, C, N)
        g, b, m, v = stats
        s = g / jnp.sqrt(v + eps)
        return (h - m[None, :, None]) * s[None, :, None] + b[None, :, None]

    def bn_f(h, stats):   # h: (B, F)
        g, b, m, v = stats
        s = g / jnp.sqrt(v + eps)
        return (h - m[None, :]) * s[None, :] + b[None, :]

    h = x_ncl
    h = jax.nn.relu(bn_c(jnp.einsum("oc,bcn->bon", params["conv1_w"], h)
                         + params["conv1_b"][None, :, None], params["bn1"]))
    h = jax.nn.relu(bn_c(jnp.einsum("oc,bcn->bon", params["conv2_w"], h)
                         + params["conv2_b"][None, :, None], params["bn2"]))
    h = jax.nn.relu(bn_c(jnp.einsum("oc,bcn->bon", params["conv3_w"], h)
                         + params["conv3_b"][None, :, None], params["bn3"]))
    g = jnp.max(h, axis=2)                                           # (B, 1024)
    f = jax.nn.relu(bn_f(g @ params["fc1_w"].T + params["fc1_b"], params["bn4"]))
    f = jax.nn.relu(bn_f(f @ params["fc2_w"].T + params["fc2_b"], params["bn5"]))
    f = f @ params["fc3_w"].T + params["fc3_b"]
    iden = jnp.array([1., 0., 0., 0., 1., 0., 0., 0., 1.], jnp.float32)
    return (f + iden[None, :]).reshape(-1, 3, 3)


def _init_params(key, channel):
    """Deterministic synthetic parameters matching STN3d.__init__ shapes."""
    ks = jax.random.split(key, 16)
    norm = lambda k, shape, s=0.05: (s * jax.random.normal(k, shape)).astype(jnp.float32)

    def bn(k, n):
        k1, k2, k3, k4 = jax.random.split(k, 4)
        gamma = 1.0 + norm(k1, (n,), 0.02)
        beta = norm(k2, (n,), 0.02)
        mean = norm(k3, (n,), 0.02)
        var = 1.0 + jnp.abs(norm(k4, (n,), 0.02))
        return (gamma, beta, mean, var)

    return {
        "conv1_w": norm(ks[0], (64, channel)),   "conv1_b": norm(ks[1], (64,)),
        "conv2_w": norm(ks[2], (128, 64)),       "conv2_b": norm(ks[3], (128,)),
        "conv3_w": norm(ks[4], (1024, 128)),     "conv3_b": norm(ks[5], (1024,)),
        "fc1_w":   norm(ks[6], (512, 1024)),     "fc1_b":   norm(ks[7], (512,)),
        "fc2_w":   norm(ks[8], (256, 512)),      "fc2_b":   norm(ks[9], (256,)),
        "fc3_w":   norm(ks[10], (9, 256)),       "fc3_b":   norm(ks[11], (9,)),
        "bn1": bn(ks[12], 64),
        "bn2": bn(ks[13], 128),
        "bn3": bn(ks[14], 1024),
        "bn4": bn(ks[15], 512),
        "bn5": bn(jax.random.fold_in(key, 99), 256),
    }


if __name__ == "__main__":
    key = jax.random.PRNGKey(0)
    k_x, k_p = jax.random.split(key)

    B, C, N = 2, 3, 16                       # batch, xyz channels, points
    x = jax.random.normal(k_x, (B, C, N), dtype=jnp.float32)   # PyTorch NCL layout
    params = _init_params(k_p, C)

    out = stn3d_forward(x, params)
    jax.block_until_ready(out)
    assert out.shape == (B, 3, 3) and out.dtype == jnp.float32

    # Loose check vs the f32 reference (kernel uses bf16 weights/matmuls).
    ref = _reference_forward(x, params)
    err = float(jnp.max(jnp.abs(out - ref)))
    assert err < 0.1, f"max abs error too large: {err}"

    print("KERNEL_OK")
</pallas_src>

<mosaic_0001>
module attributes {stable_mosaic.version = 11 : i64} {
  func.func @kernel(%arg0: i32, %arg1: i32, %arg2: memref<1x16x8xbf16, #tpu.memory_space<vmem>>, %arg3: memref<8x64xbf16, #tpu.memory_space<vmem>>, %arg4: memref<1x64xf32, #tpu.memory_space<vmem>>, %arg5: memref<64x128xbf16, #tpu.memory_space<vmem>>, %arg6: memref<1x128xf32, #tpu.memory_space<vmem>>, %arg7: memref<128x1024xbf16, #tpu.memory_space<vmem>>, %arg8: memref<1x1024xbf16, #tpu.memory_space<vmem>>, %arg9: memref<1024x512xbf16, #tpu.memory_space<vmem>>, %arg10: memref<1x512xf32, #tpu.memory_space<vmem>>, %arg11: memref<512x256xbf16, #tpu.memory_space<vmem>>, %arg12: memref<1x256xf32, #tpu.memory_space<vmem>>, %arg13: memref<256x128xbf16, #tpu.memory_space<vmem>>, %arg14: memref<1x128xf32, #tpu.memory_space<vmem>>, %arg15: memref<1x1x128xf32, #tpu.memory_space<vmem>>, %arg16: memref<1x1024xf32, #tpu.memory_space<vmem>>) attributes {dimension_semantics = [#tpu.dimension_semantics<parallel>, #tpu.dimension_semantics<arbitrary>], iteration_bounds = array<i64: 2, 1>, scalar_prefetch = 0 : i64, scratch_operands = 1 : i64, tpu.core_type = #tpu.core_type<tc>, window_params = [{transform_indices = @transform_0, window_bounds = array<i64: 1, 16, 8>}, {pipeline_mode = #tpu.pipeline_mode<synchronous>, transform_indices = @transform_1, window_bounds = array<i64: 8, 64>}, {pipeline_mode = #tpu.pipeline_mode<synchronous>, transform_indices = @transform_2, window_bounds = array<i64: 1, 64>}, {pipeline_mode = #tpu.pipeline_mode<synchronous>, transform_indices = @transform_3, window_bounds = array<i64: 64, 128>}, {pipeline_mode = #tpu.pipeline_mode<synchronous>, transform_indices = @transform_4, window_bounds = array<i64: 1, 128>}, {pipeline_mode = #tpu.pipeline_mode<synchronous>, transform_indices = @transform_5, window_bounds = array<i64: 128, 1024>}, {pipeline_mode = #tpu.pipeline_mode<synchronous>, transform_indices = @transform_6, window_bounds = array<i64: 1, 1024>}, {pipeline_mode = #tpu.pipeline_mode<synchronous>, transform_indices = @transform_7, window_bounds = array<i64: 1024, 512>}, {pipeline_mode = #tpu.pipeline_mode<synchronous>, transform_indices = @transform_8, window_bounds = array<i64: 1, 512>}, {pipeline_mode = #tpu.pipeline_mode<synchronous>, transform_indices = @transform_9, window_bounds = array<i64: 512, 256>}, {pipeline_mode = #tpu.pipeline_mode<synchronous>, transform_indices = @transform_10, window_bounds = array<i64: 1, 256>}, {pipeline_mode = #tpu.pipeline_mode<synchronous>, transform_indices = @transform_11, window_bounds = array<i64: 256, 128>}, {pipeline_mode = #tpu.pipeline_mode<synchronous>, transform_indices = @transform_12, window_bounds = array<i64: 1, 128>}, {transform_indices = @transform_13, window_bounds = array<i64: 1, 1, 128>}]} {
    %c0_i32 = arith.constant 0 : i32
    %0 = arith.cmpi eq, %arg1, %c0_i32 : i32
    %1 = arith.extui %0 : i1 to i32
    %c0_i32_0 = arith.constant 0 : i32
    %2 = arith.cmpi ne, %1, %c0_i32_0 : i32
    scf.if %2 {
      %cst_27 = arith.constant 0xFF800000 : f32
      %38 = vector.broadcast %cst_27 : f32 to vector<1x1024xf32>
      %c0_28 = arith.constant 0 : index
      %c0_29 = arith.constant 0 : index
      %39 = vector.load %arg16[%c0_28, %c0_29] : memref<1x1024xf32, #tpu.memory_space<vmem>>, vector<1x1024xf32>
      tpu.vector_store %arg16[%c0_28, %c0_29], %38 {strides = array<i32>} : memref<1x1024xf32, #tpu.memory_space<vmem>>, vector<1x1024xf32>,
    } else {
    }
    %c0 = arith.constant 0 : index
    %c0_1 = arith.constant 0 : index
    %c0_2 = arith.constant 0 : index
    %3 = vector.load %arg2[%c0, %c0_1, %c0_2] : memref<1x16x8xbf16, #tpu.memory_space<vmem>>, vector<1x16x8xbf16>
    %4 = vector.shape_cast %3 : vector<1x16x8xbf16> to vector<16x8xbf16>
    %c0_3 = arith.constant 0 : index
    %c0_4 = arith.constant 0 : index
    %5 = vector.load %arg3[%c0_3, %c0_4] : memref<8x64xbf16, #tpu.memory_space<vmem>>, vector<8x64xbf16>
    %cst = arith.constant dense<0.000000e+00> : vector<16x64xf32>
    %6 = tpu.matmul %4, %5, %cst {dimension_numbers = #tpu.dot_dimension_numbers<[1], [0], [0], [1], [0, 0, 1, 1], [], []>} : vector<16x8xbf16>, vector<8x64xbf16>, vector<16x64xf32> -> vector<16x64xf32>
    %c0_5 = arith.constant 0 : index
    %c0_6 = arith.constant 0 : index
    %7 = vector.load %arg4[%c0_5, %c0_6] : memref<1x64xf32, #tpu.memory_space<vmem>>, vector<1x64xf32>
    %8 = vector.broadcast %7 : vector<1x64xf32> to vector<16x64xf32>
    %9 = arith.addf %6, %8 : vector<16x64xf32>
    %cst_7 = arith.constant 0.000000e+00 : f32
    %10 = vector.broadcast %cst_7 : f32 to vector<16x64xf32>
    %11 = arith.maximumf %9, %10 : vector<16x64xf32>
    %12 = arith.truncf %11 : vector<16x64xf32> to vector<16x64xbf16>
    %c0_8 = arith.constant 0 : index
    %c0_9 = arith.constant 0 : index
    %13 = vector.load %arg5[%c0_8, %c0_9] : memref<64x128xbf16, #tpu.memory_space<vmem>>, vector<64x128xbf16>
    %cst_10 = arith.constant dense<0.000000e+00> : vector<16x128xf32>
    %14 = tpu.matmul %12, %13, %cst_10 {dimension_numbers = #tpu.dot_dimension_numbers<[1], [0], [0], [1], [0, 0, 1, 1], [], []>} : vector<16x64xbf16>, vector<64x128xbf16>, vector<16x128xf32> -> vector<16x128xf32>
    %c0_11 = arith.constant 0 : index
    %c0_12 = arith.constant 0 : index
    %15 = vector.load %arg6[%c0_11, %c0_12] : memref<1x128xf32, #tpu.memory_space<vmem>>, vector<1x128xf32>
    %16 = vector.broadcast %15 : vector<1x128xf32> to vector<16x128xf32>
    %17 = arith.addf %14, %16 : vector<16x128xf32>
    %cst_13 = arith.constant 0.000000e+00 : f32
    %18 = vector.broadcast %cst_13 : f32 to vector<16x128xf32>
    %19 = arith.maximumf %17, %18 : vector<16x128xf32>
    %20 = arith.truncf %19 : vector<16x128xf32> to vector<16x128xbf16>
    %c0_14 = arith.constant 0 : index
    %c0_15 = arith.constant 0 : index
    %21 = vector.load %arg7[%c0_14, %c0_15] : memref<128x1024xbf16, #tpu.memory_space<vmem>>, vector<128x1024xbf16>
    %cst_16 = arith.constant dense<0.000000e+00> : vector<16x1024xf32>
    %22 = tpu.matmul %20, %21, %cst_16 {dimension_numbers = #tpu.dot_dimension_numbers<[1], [0], [0], [1], [0, 0, 1, 1], [], []>} : vector<16x128xbf16>, vector<128x1024xbf16>, vector<16x1024xf32> -> vector<16x1024xf32>
    %23 = arith.truncf %22 : vector<16x1024xf32> to vector<16x1024xbf16>
    %c0_17 = arith.constant 0 : index
    %c0_18 = arith.constant 0 : index
    %24 = vector.load %arg8[%c0_17, %c0_18] : memref<1x1024xbf16, #tpu.memory_space<vmem>>, vector<1x1024xbf16>
    %25 = vector.broadcast %24 : vector<1x1024xbf16> to vector<16x1024xbf16>
    %26 = arith.addf %23, %25 : vector<16x1024xbf16>
    %cst_19 = arith.constant 0.000000e+00 : bf16
    %27 = vector.broadcast %cst_19 : bf16 to vector<16x1024xbf16>
    %28 = arith.maximumf %26, %27 : vector<16x1024xbf16>
    %cst_20 = arith.constant dense<0xFF80> : vector<1024xbf16>
    %29 = vector.multi_reduction <maximumf>, %28, %cst_20 [0] : vector<16x1024xbf16> to vector<1024xbf16>
    %30 = vector.shape_cast %29 : vector<1024xbf16> to vector<1x1024xbf16>
    %c0_21 = arith.constant 0 : index
    %c0_22 = arith.constant 0 : index
    %31 = vector.load %arg16[%c0_21, %c0_22] : memref<1x1024xf32, #tpu.memory_space<vmem>>, vector<1x1024xf32>
    %32 = arith.extf %30 : vector<1x1024xbf16> to vector<1x1024xf32>
    %33 = arith.maximumf %31, %32 : vector<1x1024xf32>
    %c0_23 = arith.constant 0 : index
    %c0_24 = arith.constant 0 : index
    %34 = vector.load %arg16[%c0_23, %c0_24] : memref<1x1024xf32, #tpu.memory_space<vmem>>, vector<1x1024xf32>
    tpu.vector_store %arg16[%c0_23, %c0_24], %33 {strides = array<i32>} : memref<1x1024xf32, #tpu.memory_space<vmem>>, vector<1x1024xf32>,
    %c0_i32_25 = arith.constant 0 : i32
    %35 = arith.cmpi eq, %arg1, %c0_i32_25 : i32
    %36 = arith.extui %35 : i1 to i32
    %c0_i32_26 = arith.constant 0 : i32
    %37 = arith.cmpi ne, %36, %c0_i32_26 : i32
    scf.if %37 {
      %c0_27 = arith.constant 0 : index
      %c0_28 = arith.constant 0 : index
      %38 = vector.load %arg16[%c0_27, %c0_28] : memref<1x1024xf32, #tpu.memory_space<vmem>>, vector<1x1024xf32>
      %39 = arith.truncf %38 : vector<1x1024xf32> to vector<1x1024xbf16>
      %c0_29 = arith.constant 0 : index
      %c0_30 = arith.constant 0 : index
      %40 = vector.load %arg9[%c0_29, %c0_30] : memref<1024x512xbf16, #tpu.memory_space<vmem>>, vector<1024x512xbf16>
      %cst_31 = arith.constant dense<0.000000e+00> : vector<1x512xf32>
      %41 = tpu.matmul %39, %40, %cst_31 {dimension_numbers = #tpu.dot_dimension_numbers<[1], [0], [0], [1], [0, 0, 1, 1], [], []>} : vector<1x1024xbf16>, vector<1024x512xbf16>, vector<1x512xf32> -> vector<1x512xf32>
      %c0_32 = arith.constant 0 : index
      %c0_33 = arith.constant 0 : index
      %42 = vector.load %arg10[%c0_32, %c0_33] : memref<1x512xf32, #tpu.memory_space<vmem>>, vector<1x512xf32>
      %43 = arith.addf %41, %42 : vector<1x512xf32>
      %cst_34 = arith.constant 0.000000e+00 : f32
      %44 = vector.broadcast %cst_34 : f32 to vector<1x512xf32>
      %45 = arith.maximumf %43, %44 : vector<1x512xf32>
      %46 = arith.truncf %45 : vector<1x512xf32> to vector<1x512xbf16>
      %c0_35 = arith.constant 0 : index
      %c0_36 = arith.constant 0 : index
      %47 = vector.load %arg11[%c0_35, %c0_36] : memref<512x256xbf16, #tpu.memory_space<vmem>>, vector<512x256xbf16>
      %cst_37 = arith.constant dense<0.000000e+00> : vector<1x256xf32>
      %48 = tpu.matmul %46, %47, %cst_37 {dimension_numbers = #tpu.dot_dimension_numbers<[1], [0], [0], [1], [0, 0, 1, 1], [], []>} : vector<1x512xbf16>, vector<512x256xbf16>, vector<1x256xf32> -> vector<1x256xf32>
      %c0_38 = arith.constant 0 : index
      %c0_39 = arith.constant 0 : index
      %49 = vector.load %arg12[%c0_38, %c0_39] : memref<1x256xf32, #tpu.memory_space<vmem>>, vector<1x256xf32>
      %50 = arith.addf %48, %49 : vector<1x256xf32>
      %cst_40 = arith.constant 0.000000e+00 : f32
      %51 = vector.broadcast %cst_40 : f32 to vector<1x256xf32>
      %52 = arith.maximumf %50, %51 : vector<1x256xf32>
      %53 = arith.truncf %52 : vector<1x256xf32> to vector<1x256xbf16>
      %c0_41 = arith.constant 0 : index
      %c0_42 = arith.constant 0 : index
      %54 = vector.load %arg13[%c0_41, %c0_42] : memref<256x128xbf16, #tpu.memory_space<vmem>>, vector<256x128xbf16>
      %cst_43 = arith.constant dense<0.000000e+00> : vector<1x128xf32>
      %55 = tpu.matmul %53, %54, %cst_43 {dimension_numbers = #tpu.dot_dimension_numbers<[1], [0], [0], [1], [0, 0, 1, 1], [], []>} : vector<1x256xbf16>, vector<256x128xbf16>, vector<1x128xf32> -> vector<1x128xf32>
      %c0_44 = arith.constant 0 : index
      %c0_45 = arith.constant 0 : index
      %56 = vector.load %arg14[%c0_44, %c0_45] : memref<1x128xf32, #tpu.memory_space<vmem>>, vector<1x128xf32>
      %57 = arith.addf %55, %56 : vector<1x128xf32>
      %c0_46 = arith.constant 0 : index
      %c0_47 = arith.constant 0 : index
      %c0_48 = arith.constant 0 : index
      %58 = vector.load %arg15[%c0_46, %c0_47, %c0_48] : memref<1x1x128xf32, #tpu.memory_space<vmem>>, vector<1x1x128xf32>
      %59 = vector.shape_cast %58 : vector<1x1x128xf32> to vector<1x128xf32>
      %60 = vector.shape_cast %57 : vector<1x128xf32> to vector<1x1x128xf32>
      tpu.vector_store %arg15[%c0_46, %c0_47, %c0_48], %60 {strides = array<i32>} : memref<1x1x128xf32, #tpu.memory_space<vmem>>, vector<1x1x128xf32>,
    } else {
    }
    return
  }
  func.func @transform_0(%arg0: i32, %arg1: i32) -> (i32, i32, i32) {
    %c0_i32 = arith.constant 0 : i32
    %c0_i32_0 = arith.constant 0 : i32
    return %arg0, %arg1, %c0_i32 : i32, i32, i32
  }
  func.func @transform_1(%arg0: i32, %arg1: i32) -> (i32, i32) {
    %c0_i32 = arith.constant 0 : i32
    %c0_i32_0 = arith.constant 0 : i32
    %c0_i32_1 = arith.constant 0 : i32
    return %c0_i32, %c0_i32_0 : i32, i32
  }
  func.func @transform_2(%arg0: i32, %arg1: i32) -> (i32, i32) {
    %c0_i32 = arith.constant 0 : i32
    %c0_i32_0 = arith.constant 0 : i32
    %c0_i32_1 = arith.constant 0 : i32
    return %c0_i32, %c0_i32_0 : i32, i32
  }
  func.func @transform_3(%arg0: i32, %arg1: i32) -> (i32, i32) {
    %c0_i32 = arith.constant 0 : i32
    %c0_i32_0 = arith.constant 0 : i32
    %c0_i32_1 = arith.constant 0 : i32
    return %c0_i32, %c0_i32_0 : i32, i32
  }
  func.func @transform_4(%arg0: i32, %arg1: i32) -> (i32, i32) {
    %c0_i32 = arith.constant 0 : i32
    %c0_i32_0 = arith.constant 0 : i32
    %c0_i32_1 = arith.constant 0 : i32
    return %c0_i32, %c0_i32_0 : i32, i32
  }
  func.func @transform_5(%arg0: i32, %arg1: i32) -> (i32, i32) {
    %c0_i32 = arith.constant 0 : i32
    %c0_i32_0 = arith.constant 0 : i32
    %c0_i32_1 = arith.constant 0 : i32
    return %c0_i32, %c0_i32_0 : i32, i32
  }
  func.func @transform_6(%arg0: i32, %arg1: i32) -> (i32, i32) {
    %c0_i32 = arith.constant 0 : i32
    %c0_i32_0 = arith.constant 0 : i32
    %c0_i32_1 = arith.constant 0 : i32
    return %c0_i32, %c0_i32_0 : i32, i32
  }
  func.func @transform_7(%arg0: i32, %arg1: i32) -> (i32, i32) {
    %c0_i32 = arith.constant 0 : i32
    %c0_i32_0 = arith.constant 0 : i32
    %c0_i32_1 = arith.constant 0 : i32
    return %c0_i32, %c0_i32_0 : i32, i32
  }
  func.func @transform_8(%arg0: i32, %arg1: i32) -> (i32, i32) {
    %c0_i32 = arith.constant 0 : i32
    %c0_i32_0 = arith.constant 0 : i32
    %c0_i32_1 = arith.constant 0 : i32
    return %c0_i32, %c0_i32_0 : i32, i32
  }
  func.func @transform_9(%arg0: i32, %arg1: i32) -> (i32, i32) {
    %c0_i32 = arith.constant 0 : i32
    %c0_i32_0 = arith.constant 0 : i32
    %c0_i32_1 = arith.constant 0 : i32
    return %c0_i32, %c0_i32_0 : i32, i32
  }
  func.func @transform_10(%arg0: i32, %arg1: i32) -> (i32, i32) {
    %c0_i32 = arith.constant 0 : i32
    %c0_i32_0 = arith.constant 0 : i32
    %c0_i32_1 = arith.constant 0 : i32
    return %c0_i32, %c0_i32_0 : i32, i32
  }
  func.func @transform_11(%arg0: i32, %arg1: i32) -> (i32, i32) {
    %c0_i32 = arith.constant 0 : i32
    %c0_i32_0 = arith.constant 0 : i32
    %c0_i32_1 = arith.constant 0 : i32
    return %c0_i32, %c0_i32_0 : i32, i32
  }
  func.func @transform_12(%arg0: i32, %arg1: i32) -> (i32, i32) {
    %c0_i32 = arith.constant 0 : i32
    %c0_i32_0 = arith.constant 0 : i32
    %c0_i32_1 = arith.constant 0 : i32
    return %c0_i32, %c0_i32_0 : i32, i32
  }
  func.func @transform_13(%arg0: i32, %arg1: i32) -> (i32, i32, i32) {
    %c0_i32 = arith.constant 0 : i32
    %c0_i32_0 = arith.constant 0 : i32
    %c0_i32_1 = arith.constant 0 : i32
    return %arg0, %c0_i32, %c0_i32_0 : i32, i32, i32
  }
}

</mosaic_0001>

<bundles_post_ra>
// kernel: stn3d_forward.1
= control target key start
LH: loop header
LB: loop body
LE: loop exit
PB: predicated region body
PF: predicated region fallthrough
CT: control target
= control target key end

     0   :  { %s5249_s25 = smov 0   ;;  %s5251_s26 = smov 0   ;;  %s6640_s0 = inlined_call_operand.vmem [shape: bf16[2,16,8], index: 0, kind: input, shape index: {}]   ;;  %s6641_s1 = inlined_call_operand.vmem [shape: bf16[8,64], index: 1, kind: input, shape index: {}]   ;;  %s6642_s2 = inlined_call_operand.vmem [shape: f32[1,64], index: 2, kind: input, shape index: {}]   ;;  %s6643_s3 = inlined_call_operand.vmem [shape: bf16[64,128], index: 3, kind: input, shape index: {}]   ;;  %s6644_s4 = inlined_call_operand.vmem [shape: f32[1,128], index: 4, kind: input, shape index: {}]   ;;  %s6645_s5 = inlined_call_operand.vmem [shape: bf16[128,1024], index: 5, kind: input, shape index: {}]   ;;  %s6646_s6 = inlined_call_operand.vmem [shape: bf16[1,1024], index: 6, kind: input, shape index: {}]   ;;  %s6647_s7 = inlined_call_operand.vmem [shape: bf16[1024,512], index: 7, kind: input, shape index: {}]   ;;  %s6648_s8 = inlined_call_operand.vmem [shape: f32[1,512], index: 8, kind: input, shape index: {}]   ;;  %s6649_s9 = inlined_call_operand.vmem [shape: bf16[512,256], index: 9, kind: input, shape index: {}]   ;;  %s6650_s10 = inlined_call_operand.vmem [shape: f32[1,256], index: 10, kind: input, shape index: {}]   ;;  %s6651_s11 = inlined_call_operand.vmem [shape: bf16[256,128], index: 11, kind: input, shape index: {}]   ;;  %s6652_s12 = inlined_call_operand.vmem [shape: f32[1,128], index: 12, kind: input, shape index: {}]   ;;  %s6653_s13 = inlined_call_operand.vmem [shape: f32[2,1,128], index: 13, kind: output, shape index: {}]  }
   0x1   :  { %s5253_s27 = smov 0  }
   0x2 LB: > { %s35_s28 = sadd.s32 1, %s5169_s26  ;;  %p4125_p0 = scmp.ge.s32.totalorder %s5173_s27, 1  ;;  %s5173_s27 = sphi %s5253_s27, %s23_s27   ;;  %s5169_s26 = sphi %s5251_s26, %s6655_s26   ;;  %s5165_s25 = sphi %s5249_s25, %s6654_s25  }
   0x3   : > { %p37_p1 = scmp.ge.s32.totalorder %s35_s28, 2  ;;  %p406_p2 = scmp.lt.s32.totalorder %s5173_s27, 3 }
   0x5   : > { %s6657_s28 = smov (%p37_p1, %s35_s28), 0  ;;  %p407_p3 = pnand %p4125_p0, %p406_p2 }
   0x6   : > { %v473_v0 = vld [vmem:[%s6641_s1] sm:$0xf] (!%p407_p3)  ;;  %vm490_vm0 = vcmask (!%p407_p3), 1043456   ;;  %p453_p4 = scmp.lt.s32.totalorder (!%p407_p3), %s5165_s25, 1  ;;  %v5175_v1 = vmov (!%p407_p3), 0.0   ;;  %vm5176_vm1 = vmmov (!%p407_p3), 0  }
   0x7   : > { %410 = sbr.rel (%p407_p3) target bundleno = 1692 (0x69c), region = 72  ;;  %4569 = vmatprep.subr.bf16.mxu1 (!%p407_p3), %v5175_v1  ;;  %v492_v2 = vsel (!%p407_p3), %vm490_vm0, %v473_v0, 0  ;;  %4571 = vmatprep.mubr.msk.bf16.mxu1 (!%p407_p3), %vm5176_vm1, %v5175_v1  ;;  %v4650_v3 = vld [vmem:[%s6643_s3] sm:$0xff] (!%p407_p3)   ;;  %vm486_vm2 = vcmask (!%p407_p3), 64512   ;;  %v4651_v5 = vld [vmem:[%s6643_s3 + $0x8] sm:$0xff] (!%p407_p3)   ;;  %v4652_v6 = vld [vmem:[%s6643_s3 + $0x10] sm:$0xff] (!%p407_p3)  }
   0x8   : > { %4570 = vmatpush3.bf16.msra.mxu1 (!%p407_p3), %v492_v2  ;;  %v4653_v7 = vld [vmem:[%s6643_s3 + $0x18] sm:$0xff] (!%p407_p3)   ;;  %v625_v8 = vld [vmem:[%s6645_s5] sm:$0xff] (!%p407_p3)  ;;  %v627_v12 = vld [vmem:[%s6645_s5 + $0x10] sm:$0xff] (!%p407_p3)  ;;  %vm577_vm3 = vcmask (!%p407_p3), 523264  }
   0x9   : > { %4575 = vmatprep.subr.bf16.mxu1 (!%p407_p3), %v5175_v1  ;;  %v629_v9 = vld [vmem:[%s6645_s5 + $0x20] sm:$0xff] (!%p407_p3)  ;;  %v631_v13 = vld [vmem:[%s6645_s5 + $0x30] sm:$0xff] (!%p407_p3) }
   0xa   : > { %v4137_v10 = vcombine.low (!%p407_p3), %v625_v8, %v629_v9  ;;  %v4138_v11 = vcombine.high (!%p407_p3), %v625_v8, %v629_v9  ;;  %v4142_v14 = vcombine.high (!%p407_p3), %v627_v12, %v631_v13  ;;  %v4141_v15 = vcombine.low (!%p407_p3), %v627_v12, %v631_v13  ;;  %v635_v16 = vld [vmem:[%s6645_s5 + $0x50] sm:$0xff] (!%p407_p3)  ;;  %v4128_v36 = vld [vmem:[%s6642_s2] ss:$0 sm:$0xff] (!%p407_p3) }
   0xb   : > { %v639_v17 = vld [vmem:[%s6645_s5 + $0x70] sm:$0xff] (!%p407_p3)  ;;  %v633_v43 = vld [vmem:[%s6645_s5 + $0x40] sm:$0xff] (!%p407_p3) }
   0xc   : > { %1095 = vmatprep.subr.bf16.mxu0 (!%p407_p3), %v4142_v14  ;;  %v4150_v18 = vcombine.high (!%p407_p3), %v635_v16, %v639_v17  ;;  %v4149_v19 = vcombine.low (!%p407_p3), %v635_v16, %v639_v17  ;;  %v643_v20 = vld [vmem:[%s6645_s5 + $0x90] sm:$0xff] (!%p407_p3)  ;;  %v637_v44 = vld [vmem:[%s6645_s5 + $0x60] sm:$0xff] (!%p407_p3) }
   0xd   : > { %1096 = vmatpush1.bf16.msra.mxu0 (!%p407_p3), %v4141_v15  ;;  %v647_v21 = vld [vmem:[%s6645_s5 + $0xb0] sm:$0xff] (!%p407_p3)  ;;  %v4146_v48 = vcombine.high (!%p407_p3), %v633_v43, %v637_v44  ;;  %v641_v49 = vld [vmem:[%s6645_s5 + $0x80] sm:$0xff] (!%p407_p3)  ;;  %v4145_v51 = vcombine.low (!%p407_p3), %v633_v43, %v637_v44  ;;  %v658_v44 = vld [vmem:[%s6645_s5 + $0x108] sm:$0xff] (!%p407_p3) }
   0xe   : > { %s6659_s25 = smov (!%p453_p4, %s5165_s25), 1  ;;  %1097 = vmatprep.subr.bf16.mxu0 %v4150_v18  ;;  %v4158_v22 = vcombine.high %v643_v20, %v647_v21  ;;  %v4157_v23 = vcombine.low %v643_v20, %v647_v21  ;;  %v651_v24 = vld [vmem:[%s6645_s5 + $0xd0] sm:$0xff]  ;;  %v645_v50 = vld [vmem:[%s6645_s5 + $0xa0] sm:$0xff]  ;;  %v626_v18 = vld [vmem:[%s6645_s5 + $0x8] sm:$0xff] }
   0xf   : > { %s4539_s16 = sshll.u32 %s6659_s25, 3  ;;  %v655_v25 = vld [vmem:[%s6645_s5 + $0xf0] sm:$0xff]  ;;  %v4154_v52 = vcombine.high %v641_v49, %v645_v50  ;;  %v649_v53 = vld [vmem:[%s6645_s5 + $0xc0] sm:$0xff]  ;;  %v4153_v55 = vcombine.low %v641_v49, %v645_v50  ;;  %v670_v49 = vld [vmem:[%s6645_s5 + $0x168] sm:$0xff]  ;;  %s464_s21 = scalar_lea.vmem %s6653_s13, %s6659_s25 }
  0x10   : > { %s460_s19 = scalar_lea.vmem %s6640_s0, %s4539_s16  ;;  %v4166_v26 = vcombine.high %v651_v24, %v655_v25  ;;  %v4165_v27 = vcombine.low %v651_v24, %v655_v25  ;;  %v659_v28 = vld [vmem:[%s6645_s5 + $0x110] sm:$0xff]  ;;  %v653_v54 = vld [vmem:[%s6645_s5 + $0xe0] sm:$0xff] }
  0x11   : > { %v4649_v4 = vld [vmem:[%s460_s19] sm:$0xff]   ;;  %1098 = vmatpush1.bf16.msra.mxu0 %v4149_v19  ;;  %v663_v29 = vld [vmem:[%s6645_s5 + $0x130] sm:$0xff]  ;;  %v4162_v56 = vcombine.high %v649_v53, %v653_v54  ;;  %v4161_v59 = vcombine.low %v649_v53, %v653_v54  ;;  %v630_v19 = vld [vmem:[%s6645_s5 + $0x28] sm:$0xff] }
  0x12   : > { %4572 = vmatmul.mubr.msk.bf16.vlgmr.msra.gmra.mrb[0].mxu1 %vm486_vm2, %v4649_v4  ;;  %1099 = vmatprep.subr.bf16.mxu0 %v4158_v22  ;;  %v4174_v30 = vcombine.high %v659_v28, %v663_v29  ;;  %v4173_v31 = vcombine.low %v659_v28, %v663_v29  ;;  %v667_v32 = vld [vmem:[%s6645_s5 + $0x150] sm:$0xff]  ;;  %v657_v57 = vld [vmem:[%s6645_s5 + $0x100] sm:$0xff]  ;;  %v4140_v20 = vcombine.high %v626_v18, %v630_v19  ;;  %v5177_v22 = vmov 0   ;;  %v678_v53 = vld [vmem:[%s6645_s5 + $0x1a8] sm:$0xff] }
  0x13   : > { %4576 = vmatpush3.bf16.msra.mxu1 %v4650_v3  ;;  %4583 = vmatprep.mubr.msk.bf16.mxu1 %vm5176_vm1, %v5175_v1  ;;  %v671_v33 = vld [vmem:[%s6645_s5 + $0x170] sm:$0xff]  ;;  %v661_v58 = vld [vmem:[%s6645_s5 + $0x120] sm:$0xff]  ;;  %v4139_v21 = vcombine.low %v626_v18, %v630_v19 }
  0x14   : > { %4577 = vmatprep.subr.bf16.mxu1 %v5175_v1  ;;  %v4182_v34 = vcombine.high %v667_v32, %v671_v33  ;;  %v4181_v35 = vcombine.low %v667_v32, %v671_v33  ;;  %v4170_v60 = vcombine.high %v657_v57, %v661_v58  ;;  %v665_v61 = vld [vmem:[%s6645_s5 + $0x140] sm:$0xff]  ;;  %v4169_v63 = vcombine.low %v657_v57, %v661_v58  ;;  %v683_v13 = vld [vmem:[%s6645_s5 + $0x1d0] sm:$0xff]  ;;  %v686_v57 = vld [vmem:[%s6645_s5 + $0x1e8] sm:$0xff] }
  0x15   : > { %1100 = vmatpush1.bf16.msra.mxu0 %v4157_v23  ;;  %v669_v62 = vld [vmem:[%s6645_s5 + $0x160] sm:$0xff]  ;;  %v687_v14 = vld [vmem:[%s6645_s5 + $0x1f0] sm:$0xff]  ;;  %1127 = vmatprep.mubr.bf16.mxu0 %v5177_v22 }
  0x16   : > { %1101 = vmatprep.subr.bf16.mxu0 %v4166_v26  ;;  %v4178_v0 = vcombine.high %v665_v61, %v669_v62  ;;  %v673_v2 = vld [vmem:[%s6645_s5 + $0x180] sm:$0xff]  ;;  %v4198_v16 = vcombine.high %v683_v13, %v687_v14  ;;  %v4197_v17 = vcombine.low %v683_v13, %v687_v14  ;;  %v664_v13 = vld [vmem:[%s6645_s5 + $0x138] sm:$0xff] }
  0x17   : > { %4578 = vmatpush3.bf16.msra.mxu1 %v4651_v5  ;;  %v677_v3 = vld [vmem:[%s6645_s5 + $0x1a0] sm:$0xff]  ;;  %v675_v5 = vld [vmem:[%s6645_s5 + $0x190] sm:$0xff] }
  0x18   : > { %4579 = vmatprep.subr.bf16.mxu1 %v5175_v1  ;;  %v4186_v4 = vcombine.high %v673_v2, %v677_v3  ;;  %v4131_v23 = vld [vmem:[%s6644_s4] ss:$0 sm:$0xff] }
  0x19   : > { %1102 = vmatpush1.bf16.msra.mxu0 %v4165_v27 }
  0x1a   : > { %1103 = vmatprep.subr.bf16.mxu0 %v4174_v30  ;;  %v634_v30 = vld [vmem:[%s6645_s5 + $0x48] sm:$0xff] }
  0x1b   : > { %4580 = vmatpush3.bf16.msra.mxu1 %v4652_v6  ;;  %v679_v6 = vld [vmem:[%s6645_s5 + $0x1b0] sm:$0xff] }
  0x1c   : > { %4581 = vmatprep.subr.bf16.mxu1 %v5175_v1  ;;  %v4177_v1 = vcombine.low %v665_v61, %v669_v62  ;;  %v4190_v8 = vcombine.high %v675_v5, %v679_v6  ;;  %v4189_v9 = vcombine.low %v675_v5, %v679_v6  ;;  %v632_v61 = vld [vmem:[%s6645_s5 + $0x38] sm:$0xff] }
  0x1d   : > { %1104 = vmatpush1.bf16.msra.mxu0 %v4173_v31  ;;  %v638_v31 = vld [vmem:[%s6645_s5 + $0x68] sm:$0xff]  ;;  %v648_v5 = vld [vmem:[%s6645_s5 + $0xb8] sm:$0xff] }
  0x1e   : > { %1105 = vmatprep.subr.bf16.mxu0 %v4182_v34 }
  0x1f   : > { %4582 = vmatpush3.bf16.msra.mxu1 %v4653_v7  ;;  %v4185_v7 = vcombine.low %v673_v2, %v677_v3 }
  0x20   : > { %1009 = vmatprep.subr.bf16.mxu1 %v4138_v11  ;;  %v685_v11 = vld [vmem:[%s6645_s5 + $0x1e0] sm:$0xff] }
  0x21   : > { %1106 = vmatpush1.bf16.msra.mxu0 %v4181_v35  ;;  %v4148_v35 = vcombine.high %v634_v30, %v638_v31 }
  0x22   : > { %1107 = vmatprep.subr.bf16.mxu0 %v4190_v8  ;;  %v652_v8 = vld [vmem:[%s6645_s5 + $0xd8] sm:$0xff] }
  0x25   : > { %1108 = vmatpush1.bf16.msra.mxu0 %v4189_v9  ;;  %v656_v9 = vld [vmem:[%s6645_s5 + $0xf8] sm:$0xff] }
  0x26   : > { %1109 = vmatprep.subr.bf16.mxu0 %v4198_v16  ;;  %v4167_v14 = vcombine.low %v652_v8, %v656_v9  ;;  %v668_v16 = vld [vmem:[%s6645_s5 + $0x158] sm:$0xff] }
  0x29   : > { %1110 = vmatpush1.bf16.msra.mxu0 %v4197_v17  ;;  %v672_v17 = vld [vmem:[%s6645_s5 + $0x178] sm:$0xff] }
  0x2a   : > { %v4184_v19 = vcombine.high %v668_v16, %v672_v17 }
  0xe5   : > { %v528_v37 = vpop.f32.mrb[0].mxu1 }
  0xe6   : > { %v529_v38 = vadd.f32 %v4128_v36, %v528_v37  ;;  %v4573_v39 = vpop.f32.mrb[1].mxu1  ;;  %v646_v37 = vld [vmem:[%s6645_s5 + $0xa8] sm:$0xff] }
  0xe7   : > { %v531_v40 = vpop.f32.mrb[2].mxu1 }
  0xe8   : > { %v532_v41 = vadd.f32 %v4128_v36, %v531_v40  ;;  %v4574_v42 = vpop.f32.mrb[3].mxu1  ;;  %v535_v45 = vmax.f32 %v529_v38, 0.0  ;;  %v642_v36 = vld [vmem:[%s6645_s5 + $0x88] sm:$0xff]  ;;  %v4147_v38 = vcombine.low %v634_v30, %v638_v31  ;;  %v4657_v30 = vld [vmem:[%s6647_s7 + $0x4] ss:$16 sps:$4 sm:$0xff]  }
  0xe9   : > { %v4156_v39 = vcombine.high %v642_v36, %v646_v37  ;;  %v650_v40 = vld [vmem:[%s6645_s5 + $0xc8] sm:$0xff]  ;;  %v4155_v42 = vcombine.low %v642_v36, %v646_v37  ;;  %3072 = vmatprep.subr.bf16.mxu0 %v4657_v30  ;;  %v4661_v36 = vld [vmem:[%s6647_s7 + $0x20] ss:$16 sps:$4 sm:$0xff]  }
  0xea   : > { %v536_v46 = vmax.f32 %v532_v41, 0.0  ;;  %v654_v41 = vld [vmem:[%s6645_s5 + $0xe8] sm:$0xff]  ;;  %v4745_v30 = vld [vmem:[%s6647_s7 + $0x1e0] ss:$16 sps:$4 sm:$0xff]  }
  0xeb   : > { %v4164_v43 = vcombine.high %v650_v40, %v654_v41  ;;  %v4660_v31 = vld [vmem:[%s6647_s7 + $0xc] ss:$16 sps:$4 sm:$0xff]   ;;  %v4664_v37 = vld [vmem:[%s6647_s7 + $0x28] ss:$16 sps:$4 sm:$0xff]  }
  0xec   : > { %v537_v47 = vpack.c.bf16 %v536_v46, %v535_v45  ;;  %v662_v45 = vld [vmem:[%s6645_s5 + $0x128] sm:$0xff]  ;;  %v4163_v46 = vcombine.low %v650_v40, %v654_v41  ;;  %v4667_v40 = vld [vmem:[%s6647_s7 + $0x40] ss:$16 sps:$4 sm:$0xff]  }
  0xed   : > { %v4171_v50 = vcombine.low %v658_v44, %v662_v45  ;;  %v4670_v41 = vld [vmem:[%s6647_s7 + $0x48] ss:$16 sps:$4 sm:$0xff]  }
  0xee   : > { %4584 = vmatmul.mubr.msk.bf16.vlgmr.msra.gmra.mrb[4].mxu1 %vm577_vm3, %v537_v47  ;;  %v4172_v47 = vcombine.high %v658_v44, %v662_v45  ;;  %v4673_v44 = vld [vmem:[%s6647_s7 + $0x60] ss:$16 sps:$4 sm:$0xff]   ;;  %v4676_v45 = vld [vmem:[%s6647_s7 + $0x68] ss:$16 sps:$4 sm:$0xff]  }
  0xef   : > { %1010 = vmatpush1.bf16.msra.mxu1 %v4137_v10  ;;  %v681_v10 = vld [vmem:[%s6645_s5 + $0x1c0] sm:$0xff]  ;;  %1041 = vmatprep.mubr.bf16.mxu1 %v5177_v22 }
  0xf0   : > { %1011 = vmatprep.subr.bf16.mxu1 %v4146_v48  ;;  %v4194_v12 = vcombine.high %v681_v10, %v685_v11  ;;  %v4193_v15 = vcombine.low %v681_v10, %v685_v11  ;;  %v666_v48 = vld [vmem:[%s6645_s5 + $0x148] sm:$0xff]  ;;  %v4168_v11 = vcombine.high %v652_v8, %v656_v9  ;;  %v4715_v8 = vld [vmem:[%s6647_s7 + $0x140] ss:$16 sps:$4 sm:$0xff]  }
  0xf1   : > { %v4179_v54 = vcombine.low %v666_v48, %v670_v49  ;;  %v4718_v9 = vld [vmem:[%s6647_s7 + $0x148] ss:$16 sps:$4 sm:$0xff]  }
  0xf3   : > { %1012 = vmatpush1.bf16.msra.mxu1 %v4145_v51  ;;  %v4180_v51 = vcombine.high %v666_v48, %v670_v49  ;;  %v4679_v48 = vld [vmem:[%s6647_s7 + $0x80] ss:$16 sps:$4 sm:$0xff]   ;;  %v4682_v49 = vld [vmem:[%s6647_s7 + $0x88] ss:$16 sps:$4 sm:$0xff]  }
  0xf4   : > { %1013 = vmatprep.subr.bf16.mxu1 %v4154_v52  ;;  %v674_v52 = vld [vmem:[%s6645_s5 + $0x188] sm:$0xff] }
  0xf5   : > { %v4187_v58 = vcombine.low %v674_v52, %v678_v53 }
  0xf7   : > { %1014 = vmatpush1.bf16.msra.mxu1 %v4153_v55  ;;  %v4188_v55 = vcombine.high %v674_v52, %v678_v53  ;;  %v4685_v52 = vld [vmem:[%s6647_s7 + $0xa0] ss:$16 sps:$4 sm:$0xff]   ;;  %v4688_v53 = vld [vmem:[%s6647_s7 + $0xa8] ss:$16 sps:$4 sm:$0xff]  }
  0xf8   : > { %1015 = vmatprep.subr.bf16.mxu1 %v4162_v56  ;;  %v682_v56 = vld [vmem:[%s6645_s5 + $0x1c8] sm:$0xff] }
  0xf9   : > { %v4195_v62 = vcombine.low %v682_v56, %v686_v57 }
  0xfb   : > { %1016 = vmatpush1.bf16.msra.mxu1 %v4161_v59  ;;  %v4196_v59 = vcombine.high %v682_v56, %v686_v57  ;;  %v4691_v56 = vld [vmem:[%s6647_s7 + $0xc0] ss:$16 sps:$4 sm:$0xff]   ;;  %v4694_v57 = vld [vmem:[%s6647_s7 + $0xc8] ss:$16 sps:$4 sm:$0xff]  }
  0xfc   : > { %1017 = vmatprep.subr.bf16.mxu1 %v4170_v60  ;;  %v628_v60 = vld [vmem:[%s6645_s5 + $0x18] sm:$0xff] }
  0xfd   : > { %v4143_v2 = vcombine.low %v628_v60, %v632_v61 }
  0xff   : > { %1018 = vmatpush1.bf16.msra.mxu1 %v4169_v63  ;;  %v4144_v63 = vcombine.high %v628_v60, %v632_v61  ;;  %v4697_v60 = vld [vmem:[%s6647_s7 + $0xe0] ss:$16 sps:$4 sm:$0xff]   ;;  %v4700_v61 = vld [vmem:[%s6647_s7 + $0xe8] ss:$16 sps:$4 sm:$0xff]  }
 0x100   : > { %1019 = vmatprep.subr.bf16.mxu1 %v4178_v0  ;;  %v636_v0 = vld [vmem:[%s6645_s5 + $0x58] sm:$0xff] }
 0x103   : > { %1020 = vmatpush1.bf16.msra.mxu1 %v4177_v1  ;;  %v640_v1 = vld [vmem:[%s6645_s5 + $0x78] sm:$0xff] }
 0x104   : > { %1021 = vmatprep.subr.bf16.mxu1 %v4186_v4  ;;  %v4152_v3 = vcombine.high %v636_v0, %v640_v1  ;;  %v644_v4 = vld [vmem:[%s6645_s5 + $0x98] sm:$0xff]  ;;  %v4151_v6 = vcombine.low %v636_v0, %v640_v1  ;;  %v4703_v0 = vld [vmem:[%s6647_s7 + $0x100] ss:$16 sps:$4 sm:$0xff]  }
 0x105   : > { %v4159_v10 = vcombine.low %v644_v4, %v648_v5  ;;  %v4706_v1 = vld [vmem:[%s6647_s7 + $0x108] ss:$16 sps:$4 sm:$0xff]  }
 0x107   : > { %1022 = vmatpush1.bf16.msra.mxu1 %v4185_v7  ;;  %v4160_v7 = vcombine.high %v644_v4, %v648_v5  ;;  %v4709_v4 = vld [vmem:[%s6647_s7 + $0x120] ss:$16 sps:$4 sm:$0xff]   ;;  %v4712_v5 = vld [vmem:[%s6647_s7 + $0x128] ss:$16 sps:$4 sm:$0xff]  }
 0x108   : > { %1023 = vmatprep.subr.bf16.mxu1 %v4194_v12  ;;  %v660_v12 = vld [vmem:[%s6645_s5 + $0x118] sm:$0xff] }
 0x109   : > { %v4175_v18 = vcombine.low %v660_v12, %v664_v13 }
 0x10b   : > { %1024 = vmatpush1.bf16.msra.mxu1 %v4193_v15  ;;  %v4176_v15 = vcombine.high %v660_v12, %v664_v13  ;;  %v4721_v12 = vld [vmem:[%s6647_s7 + $0x160] ss:$16 sps:$4 sm:$0xff]   ;;  %v4724_v13 = vld [vmem:[%s6647_s7 + $0x168] ss:$16 sps:$4 sm:$0xff]  }
 0x10c   : > { %1052 = vmatprep.subr.bf16.mxu1 %v4140_v20  ;;  %v676_v20 = vld [vmem:[%s6645_s5 + $0x198] sm:$0xff] }
 0x1c1   : > { %v615_v24 = vpop.f32.mrb[4].mxu1 }
 0x1c2   : > { %v616_v25 = vadd.f32 %v4131_v23, %v615_v24  ;;  %v4585_v26 = vpop.f32.mrb[5].mxu1 }
 0x1c3   : > { %v618_v27 = vpop.f32.mrb[6].mxu1  ;;  %v688_v26 = vld [vmem:[%s6645_s5 + $0x1f8] sm:$0xff] }
 0x1c4   : > { %v619_v28 = vadd.f32 %v4131_v23, %v618_v27  ;;  %v4586_v29 = vpop.f32.mrb[7].mxu1  ;;  %v622_v32 = vmax.f32 %v616_v25, 0.0  ;;  %v4183_v23 = vcombine.low %v668_v16, %v672_v17  ;;  %v684_v25 = vld [vmem:[%s6645_s5 + $0x1d8] sm:$0xff]  ;;  %v4727_v16 = vld [vmem:[%s6647_s7 + $0x180] ss:$16 sps:$4 sm:$0xff]  }
 0x1c5   : > { %v4199_v29 = vcombine.low %v684_v25, %v688_v26  ;;  %v4730_v17 = vld [vmem:[%s6647_s7 + $0x188] ss:$16 sps:$4 sm:$0xff]  }
 0x1c6   : > { %v623_v33 = vmax.f32 %v619_v28, 0.0  ;;  %v4200_v28 = vcombine.high %v684_v25, %v688_v26  ;;  %v4739_v25 = vld [vmem:[%s6647_s7 + $0x1c0] ss:$16 sps:$4 sm:$0xff]   ;;  %v4742_v26 = vld [vmem:[%s6647_s7 + $0x1c8] ss:$16 sps:$4 sm:$0xff]  }
 0x1c8   : > { %v5404_v34 = vpack.c.bf16 %v623_v33, %v622_v32  ;;  %v4655_v32 = vld [vmem:[%s6647_s7] ss:$16 sps:$4 sm:$0xff]   ;;  %v4658_v33 = vld [vmem:[%s6647_s7 + $0x8] ss:$16 sps:$4 sm:$0xff]  }
 0x1ca   : > { %1042 = vmatmul.mubr.bf16.vlgmr.msra.gmra.mrb[8].mxu1 %v5404_v34  ;;  %1128 = vmatmul.mubr.bf16.vlgmr.msra.gmra.mrb[0].mxu0 %v5404_v34 }
 0x1cb   : > { %1053 = vmatpush1.bf16.msra.mxu1 %v4139_v21  ;;  %1084 = vmatprep.mubr.bf16.mxu1 %v5177_v22  ;;  %v680_v21 = vld [vmem:[%s6645_s5 + $0x1b8] sm:$0xff] }
 0x1cc   : > { %1054 = vmatprep.subr.bf16.mxu1 %v4148_v35  ;;  %v4192_v24 = vcombine.high %v676_v20, %v680_v21  ;;  %v4191_v27 = vcombine.low %v676_v20, %v680_v21  ;;  %3073 = vmatpush1.bf16.msra.mxu0 %v4655_v32  ;;  %v4666_v35 = vld [vmem:[%s6647_s7 + $0x2c] ss:$16 sps:$4 sm:$0xff]   ;;  %v4733_v20 = vld [vmem:[%s6647_s7 + $0x1a0] ss:$16 sps:$4 sm:$0xff]   ;;  %v4736_v21 = vld [vmem:[%s6647_s7 + $0x1a8] ss:$16 sps:$4 sm:$0xff]  }
 0x1cd   : > { %v4748_v32 = vld [vmem:[%s6647_s7 + $0x1e8] ss:$16 sps:$4 sm:$0xff]  }
 0x1cf   : > { %1055 = vmatpush1.bf16.msra.mxu1 %v4147_v38  ;;  %v4669_v38 = vld [vmem:[%s6647_s7 + $0x44] ss:$16 sps:$4 sm:$0xff]  }
 0x1d0   : > { %1056 = vmatprep.subr.bf16.mxu1 %v4156_v39  ;;  %v4672_v39 = vld [vmem:[%s6647_s7 + $0x4c] ss:$16 sps:$4 sm:$0xff]  }
 0x1d3   : > { %1057 = vmatpush1.bf16.msra.mxu1 %v4155_v42  ;;  %v4675_v42 = vld [vmem:[%s6647_s7 + $0x64] ss:$16 sps:$4 sm:$0xff]  }
 0x1d4   : > { %1058 = vmatprep.subr.bf16.mxu1 %v4164_v43  ;;  %v4678_v43 = vld [vmem:[%s6647_s7 + $0x6c] ss:$16 sps:$4 sm:$0xff]  }
 0x1d7   : > { %1059 = vmatpush1.bf16.msra.mxu1 %v4163_v46  ;;  %v4681_v46 = vld [vmem:[%s6647_s7 + $0x84] ss:$16 sps:$4 sm:$0xff]  }
 0x1d8   : > { %1060 = vmatprep.subr.bf16.mxu1 %v4172_v47  ;;  %v4684_v47 = vld [vmem:[%s6647_s7 + $0x8c] ss:$16 sps:$4 sm:$0xff]  }
 0x1db   : > { %1061 = vmatpush1.bf16.msra.mxu1 %v4171_v50  ;;  %v4687_v50 = vld [vmem:[%s6647_s7 + $0xa4] ss:$16 sps:$4 sm:$0xff]  }
 0x1dc   : > { %1062 = vmatprep.subr.bf16.mxu1 %v4180_v51  ;;  %v4690_v51 = vld [vmem:[%s6647_s7 + $0xac] ss:$16 sps:$4 sm:$0xff]  }
 0x1df   : > { %1063 = vmatpush1.bf16.msra.mxu1 %v4179_v54  ;;  %v4693_v54 = vld [vmem:[%s6647_s7 + $0xc4] ss:$16 sps:$4 sm:$0xff]  }
 0x1e0   : > { %1064 = vmatprep.subr.bf16.mxu1 %v4188_v55  ;;  %v4696_v55 = vld [vmem:[%s6647_s7 + $0xcc] ss:$16 sps:$4 sm:$0xff]  }
 0x1e3   : > { %1065 = vmatpush1.bf16.msra.mxu1 %v4187_v58  ;;  %v4699_v58 = vld [vmem:[%s6647_s7 + $0xe4] ss:$16 sps:$4 sm:$0xff]  }
 0x1e4   : > { %1066 = vmatprep.subr.bf16.mxu1 %v4196_v59  ;;  %v4702_v59 = vld [vmem:[%s6647_s7 + $0xec] ss:$16 sps:$4 sm:$0xff]  }
 0x1e7   : > { %1067 = vmatpush1.bf16.msra.mxu1 %v4195_v62  ;;  %v4705_v62 = vld [vmem:[%s6647_s7 + $0x104] ss:$16 sps:$4 sm:$0xff]  }
 0x1e8   : > { %1138 = vmatprep.subr.bf16.mxu1 %v4144_v63  ;;  %v4708_v63 = vld [vmem:[%s6647_s7 + $0x10c] ss:$16 sps:$4 sm:$0xff]  }
 0x1ea   : > { %1085 = vmatmul.mubr.bf16.vlgmr.msra.gmra.mrb[12].mxu1 %v5404_v34 }
 0x1eb   : > { %1139 = vmatpush1.bf16.msra.mxu1 %v4143_v2  ;;  %1170 = vmatprep.mubr.bf16.mxu1 %v5177_v22  ;;  %v4711_v2 = vld [vmem:[%s6647_s7 + $0x124] ss:$16 sps:$4 sm:$0xff]  }
 0x1ec   : > { %1140 = vmatprep.subr.bf16.mxu1 %v4152_v3  ;;  %v4714_v3 = vld [vmem:[%s6647_s7 + $0x12c] ss:$16 sps:$4 sm:$0xff]  }
 0x1ef   : > { %1141 = vmatpush1.bf16.msra.mxu1 %v4151_v6  ;;  %v4717_v6 = vld [vmem:[%s6647_s7 + $0x144] ss:$16 sps:$4 sm:$0xff]  }
 0x1f0   : > { %1142 = vmatprep.subr.bf16.mxu1 %v4160_v7  ;;  %v4720_v7 = vld [vmem:[%s6647_s7 + $0x14c] ss:$16 sps:$4 sm:$0xff]  }
 0x1f3   : > { %1143 = vmatpush1.bf16.msra.mxu1 %v4159_v10  ;;  %v4723_v10 = vld [vmem:[%s6647_s7 + $0x164] ss:$16 sps:$4 sm:$0xff]  }
 0x1f4   : > { %1144 = vmatprep.subr.bf16.mxu1 %v4168_v11  ;;  %v4726_v11 = vld [vmem:[%s6647_s7 + $0x16c] ss:$16 sps:$4 sm:$0xff]  }
 0x1f7   : > { %1145 = vmatpush1.bf16.msra.mxu1 %v4167_v14  ;;  %v4729_v14 = vld [vmem:[%s6647_s7 + $0x184] ss:$16 sps:$4 sm:$0xff]  }
 0x1f8   : > { %1146 = vmatprep.subr.bf16.mxu1 %v4176_v15  ;;  %v4732_v15 = vld [vmem:[%s6647_s7 + $0x18c] ss:$16 sps:$4 sm:$0xff]  }
 0x1fb   : > { %1147 = vmatpush1.bf16.msra.mxu1 %v4175_v18  ;;  %v4735_v18 = vld [vmem:[%s6647_s7 + $0x1a4] ss:$16 sps:$4 sm:$0xff]  }
 0x1fc   : > { %1148 = vmatprep.subr.bf16.mxu1 %v4184_v19  ;;  %v4738_v19 = vld [vmem:[%s6647_s7 + $0x1ac] ss:$16 sps:$4 sm:$0xff]  }
 0x1ff   : > { %1149 = vmatpush1.bf16.msra.mxu1 %v4183_v23  ;;  %v4741_v23 = vld [vmem:[%s6647_s7 + $0x1c4] ss:$16 sps:$4 sm:$0xff]  }
 0x200   : > { %1150 = vmatprep.subr.bf16.mxu1 %v4192_v24  ;;  %v4744_v24 = vld [vmem:[%s6647_s7 + $0x1cc] ss:$16 sps:$4 sm:$0xff]  }
 0x203   : > { %1151 = vmatpush1.bf16.msra.mxu1 %v4191_v27  ;;  %v5178_v27 = vmov 1966171168  }
 0x204   : > { %1152 = vmatprep.subr.bf16.mxu1 %v4200_v28  ;;  %v1193_v28 = vunpack.c.l.s4 %v5178_v27 }
 0x207   : > { %1153 = vmatpush1.bf16.msra.mxu1 %v4199_v29  ;;  %v1195_v29 = vlaneseq }
 0x208   : > { %3236 = vmatprep.subr.bf16.mxu1 %v4660_v31  ;;  %v4747_v31 = vld [vmem:[%s6647_s7 + $0x1e4] ss:$16 sps:$4 sm:$0xff]  }
 0x20a   : > { %1171 = vmatmul.mubr.bf16.vlgmr.msra.gmra.mrb[16].mxu1 %v5404_v34  ;;  %v4663_v34 = vld [vmem:[%s6647_s7 + $0x24] ss:$16 sps:$4 sm:$0xff]  }
 0x20b   : > { %3237 = vmatpush1.bf16.msra.mxu1 %v4658_v33  ;;  %3074 = vmatprep.subr.bf16.mxu0 %v4663_v34  ;;  %v4750_v33 = vld [vmem:[%s6647_s7 + $0x1ec] ss:$16 sps:$4 sm:$0xff]   ;;  %v1194_v34 = vunpack.c.0.s8 %v1193_v28 }
 0x20c   : > { %3238 = vmatprep.subr.bf16.mxu1 %v4666_v35  ;;  %3075 = vmatpush1.bf16.msra.mxu0 %v4661_v36  ;;  %v5688_v35 = vshrl.u32 %v1195_v29, 7  ;;  %v4753_v36 = vld [vmem:[%s6647_s7 + $0x204] ss:$16 sps:$4 sm:$0xff]  }
 0x20d   : > { %3076 = vmatprep.subr.bf16.mxu0 %v4669_v38  ;;  %v1189_v38 = vld [vmem:[%s6646_s6] sm:$0xff] }
 0x20f   : > { %3239 = vmatpush1.bf16.msra.mxu1 %v4664_v37  ;;  %v4756_v37 = vld [vmem:[%s6647_s7 + $0x20c] ss:$16 sps:$4 sm:$0xff]  }
 0x210   : > { %3240 = vmatprep.subr.bf16.mxu1 %v4672_v39  ;;  %3077 = vmatpush1.bf16.msra.mxu0 %v4667_v40  ;;  %v5700_v39 = vsub.s32 %v1194_v34, %v5688_v35  ;;  %v1191_v40 = vcombine.high %v1189_v38, %v1189_v38 }
 0x211   : > { %3078 = vmatprep.subr.bf16.mxu0 %v4675_v42 }
 0x212   : > { %v1205_v42 = vrot.slane %v1191_v40, %v5700_v39 }
 0x213   : > { %3241 = vmatpush1.bf16.msra.mxu1 %v4670_v41  ;;  %v1198_v41 = vrot.slane %v1189_v38, %v5700_v39 }
 0x214   : > { %3242 = vmatprep.subr.bf16.mxu1 %v4678_v43  ;;  %3079 = vmatpush1.bf16.msra.mxu0 %v4673_v44  ;;  %v1207_v44 = vcombine.high %v1205_v42, %v1205_v42 }
 0x215   : > { %3080 = vmatprep.subr.bf16.mxu0 %v4681_v46  ;;  %v1206_v43 = vcombine.high %v1198_v41, %v1198_v41  ;;  %v5708_v46 = vrot.slane %v1205_v42, %v5700_v39 }
 0x217   : > { %3243 = vmatpush1.bf16.msra.mxu1 %v4676_v45  ;;  %v5705_v45 = vrot.slane %v1198_v41, %v5700_v39 }
 0x218   : > { %3244 = vmatprep.subr.bf16.mxu1 %v4684_v47  ;;  %3081 = vmatpush1.bf16.msra.mxu0 %v4679_v48  ;;  %v5711_v47 = vrot.slane %v1206_v43, %v5700_v39  ;;  %v5714_v48 = vrot.slane %v1207_v44, %v5700_v39 }
 0x219   : > { %3082 = vmatprep.subr.bf16.mxu0 %v4687_v50  ;;  %v5719_v50 = vsub.s32 0, %v5688_v35 }
 0x21b   : > { %3245 = vmatpush1.bf16.msra.mxu1 %v4682_v49  ;;  %v1241_v49 = vpack.i.b16 %v5705_v45, %v5705_v45 }
 0x21c   : > { %3246 = vmatprep.subr.bf16.mxu1 %v4690_v51  ;;  %3083 = vmatpush1.bf16.msra.mxu0 %v4685_v52  ;;  %v1269_v51 = vpack.i.b16 %v5708_v46, %v5708_v46  ;;  %v1248_v52 = vpack.i.b16 %v5711_v47, %v5711_v47 }
 0x21d   : > { %3084 = vmatprep.subr.bf16.mxu0 %v4693_v54 }
 0x21f   : > { %3247 = vmatpush1.bf16.msra.mxu1 %v4688_v53  ;;  %v1276_v53 = vpack.i.b16 %v5714_v48, %v5714_v48 }
 0x220   : > { %3248 = vmatprep.subr.bf16.mxu1 %v4696_v55  ;;  %3085 = vmatpush1.bf16.msra.mxu0 %v4691_v56 }
 0x221   : > { %3086 = vmatprep.subr.bf16.mxu0 %v4699_v58  ;;  %v1246_v58 = vrot.slane %v1241_v49, %v5719_v50 }
 0x223   : > { %3249 = vmatpush1.bf16.msra.mxu1 %v4694_v57 }
 0x224   : > { %3250 = vmatprep.subr.bf16.mxu1 %v4702_v59  ;;  %3087 = vmatpush1.bf16.msra.mxu0 %v4697_v60  ;;  %v1274_v59 = vrot.slane %v1269_v51, %v5719_v50 }
 0x225   : > { %3088 = vmatprep.subr.bf16.mxu0 %v4705_v62  ;;  %v1253_v62 = vrot.slane %v1248_v52, %v5719_v50 }
 0x227   : > { %3251 = vmatpush1.bf16.msra.mxu1 %v4700_v61 }
 0x228   : > { %3252 = vmatprep.subr.bf16.mxu1 %v4708_v63  ;;  %3089 = vmatpush1.bf16.msra.mxu0 %v4703_v0  ;;  %v1281_v63 = vrot.slane %v1276_v53, %v5719_v50 }
 0x229   : > { %3090 = vmatprep.subr.bf16.mxu0 %v4711_v2 }
 0x22b   : > { %3253 = vmatpush1.bf16.msra.mxu1 %v4706_v1 }
 0x22c   : > { %3254 = vmatprep.subr.bf16.mxu1 %v4714_v3  ;;  %3091 = vmatpush1.bf16.msra.mxu0 %v4709_v4 }
 0x22d   : > { %3092 = vmatprep.subr.bf16.mxu0 %v4717_v6 }
 0x22f   : > { %3255 = vmatpush1.bf16.msra.mxu1 %v4712_v5 }
 0x230   : > { %3256 = vmatprep.subr.bf16.mxu1 %v4720_v7  ;;  %3093 = vmatpush1.bf16.msra.mxu0 %v4715_v8 }
 0x231   : > { %3094 = vmatprep.subr.bf16.mxu0 %v4723_v10 }
 0x233   : > { %3257 = vmatpush1.bf16.msra.mxu1 %v4718_v9 }
 0x234   : > { %3258 = vmatprep.subr.bf16.mxu1 %v4726_v11  ;;  %3095 = vmatpush1.bf16.msra.mxu0 %v4721_v12 }
 0x235   : > { %3096 = vmatprep.subr.bf16.mxu0 %v4729_v14 }
 0x237   : > { %3259 = vmatpush1.bf16.msra.mxu1 %v4724_v13 }
 0x238   : > { %3260 = vmatprep.subr.bf16.mxu1 %v4732_v15  ;;  %3097 = vmatpush1.bf16.msra.mxu0 %v4727_v16 }
 0x239   : > { %3098 = vmatprep.subr.bf16.mxu0 %v4735_v18 }
 0x23b   : > { %3261 = vmatpush1.bf16.msra.mxu1 %v4730_v17 }
 0x23c   : > { %3262 = vmatprep.subr.bf16.mxu1 %v4738_v19  ;;  %3099 = vmatpush1.bf16.msra.mxu0 %v4733_v20 }
 0x23d   : > { %3100 = vmatprep.subr.bf16.mxu0 %v4741_v23 }
 0x23f   : > { %3263 = vmatpush1.bf16.msra.mxu1 %v4736_v21 }
 0x240   : > { %3264 = vmatprep.subr.bf16.mxu1 %v4744_v24  ;;  %3101 = vmatpush1.bf16.msra.mxu0 %v4739_v25 }
 0x241   : > { %3102 = vmatprep.subr.bf16.mxu0 %v4747_v31 }
 0x243   : > { %3265 = vmatpush1.bf16.msra.mxu1 %v4742_v26 }
 0x244   : > { %3266 = vmatprep.subr.bf16.mxu1 %v4750_v33  ;;  %3103 = vmatpush1.bf16.msra.mxu0 %v4745_v30 }
 0x245   : > { %3113 = vmatprep.subr.bf16.mxu0 %v4753_v36 }
 0x247   : > { %3267 = vmatpush1.bf16.msra.mxu1 %v4748_v32 }
 0x248   : > { %3277 = vmatprep.subr.bf16.mxu1 %v4756_v37 }
 0x29d   : > { %v1043_v54 = vpop.f32.mrb[8].mxu1  ;;  %v1129_v55 = vpop.f32.mrb[0].mxu0 }
 0x29e   : > { %v1045_v56 = vpop.f32.mrb[9].mxu1  ;;  %v1131_v57 = vpop.f32.mrb[1].mxu0 }
 0x29f   : > { %v1047_v60 = vpop.f32.mrb[10].mxu1  ;;  %v1133_v61 = vpop.f32.mrb[2].mxu0 }
 0x2a0   : > { %v1181_v0 = vpack.c.bf16 %v1047_v60, %v1043_v54  ;;  %v1185_v1 = vpack.c.bf16 %v1133_v61, %v1129_v55  ;;  %v1049_v2 = vpop.f32.mrb[11].mxu1  ;;  %v1135_v3 = vpop.f32.mrb[3].mxu0  ;;  %v1236_v60 = vcombine.high %v5705_v45, %v5705_v45 }
 0x2a1   : > { %v1182_v4 = vpack.c.bf16 %v1049_v2, %v1045_v56  ;;  %v1186_v5 = vpack.c.bf16 %v1135_v3, %v1131_v57 }
 0x2a2   : > { %v1296_v6 = vadd.bf16 %v1246_v58, %v1181_v0  ;;  %v1300_v7 = vadd.bf16 %v1274_v59, %v1185_v1 }
 0x2a3   : > { %v1297_v8 = vadd.bf16 %v1253_v62, %v1182_v4  ;;  %v1301_v9 = vadd.bf16 %v1281_v63, %v1186_v5  ;;  %v1238_v63 = vcombine.high %v5711_v47, %v5711_v47  ;;  %v1255_v4 = vpack.i.b16 %v1236_v60, %v1236_v60 }
 0x2a4   : > { %v1304_v10 = vmax.bf16 %v5177_v22, %v1296_v6  ;;  %v1308_v11 = vmax.bf16 %v5177_v22, %v1300_v7 }
 0x2a5   : > { %v1305_v12 = vmax.bf16 %v5177_v22, %v1297_v8  ;;  %v1309_v13 = vmax.bf16 %v5177_v22, %v1301_v9  ;;  %v1262_v7 = vpack.i.b16 %v1238_v63, %v1238_v63  ;;  %v1260_v45 = vrot.slane %v1255_v4, %v5719_v50 }
 0x2a6   : > { %v1312_v14 = vunpack.i.l.bf16 %v1304_v10  ;;  %v1313_v15 = vunpack.i.h.bf16 %v1304_v10  ;;  %v1352_v16 = vunpack.i.l.bf16 %v1308_v11  ;;  %v1353_v17 = vunpack.i.h.bf16 %v1308_v11 }
 0x2a7   : > { %v1322_v18 = vunpack.i.l.bf16 %v1305_v12  ;;  %v1323_v19 = vunpack.i.h.bf16 %v1305_v12  ;;  %v1362_v20 = vunpack.i.l.bf16 %v1309_v13  ;;  %v1363_v21 = vunpack.i.h.bf16 %v1309_v13 }
 0x2a8   : > { %v1314_v23 = vmax.f32 %v1312_v14, %v1313_v15  ;;  %v1354_v24 = vmax.f32 %v1352_v16, %v1353_v17  ;;  %v1267_v11 = vrot.slane %v1262_v7, %v5719_v50 }
 0x2a9   : > { %v1324_v25 = vmax.f32 %v1322_v18, %v1323_v19  ;;  %v1364_v26 = vmax.f32 %v1362_v20, %v1363_v21 }
 0x2aa   : > { %v1315_v27 = vrot.slane %v1314_v23, 4  ;;  %v1355_v28 = vrot.slane %v1354_v24, 4 }
 0x2ab   : > { %v1325_v29 = vrot.slane %v1324_v25, 4  ;;  %v1365_v30 = vrot.slane %v1364_v26, 4 }
 0x2ac   : > { %v1316_v31 = vmax.f32 %v1314_v23, %v1315_v27  ;;  %v1356_v32 = vmax.f32 %v1354_v24, %v1355_v28 }
 0x2ad   : > { %v1326_v33 = vmax.f32 %v1324_v25, %v1325_v29  ;;  %v1366_v34 = vmax.f32 %v1364_v26, %v1365_v30 }
 0x2ae   : > { %v1317_v36 = vrot.slane %v1316_v31, 2  ;;  %v1357_v37 = vrot.slane %v1356_v32, 2 }
 0x2af   : > { %v1327_v38 = vrot.slane %v1326_v33, 2  ;;  %v1367_v40 = vrot.slane %v1366_v34, 2 }
 0x2b0   : > { %v1318_v41 = vmax.f32 %v1316_v31, %v1317_v36  ;;  %v1358_v42 = vmax.f32 %v1356_v32, %v1357_v37 }
 0x2b1   : > { %v1328_v43 = vmax.f32 %v1326_v33, %v1327_v38  ;;  %v1368_v44 = vmax.f32 %v1366_v34, %v1367_v40  ;;  %v1237_v40 = vcombine.high %v5708_v46, %v5708_v46 }
 0x2b2   : > { %v1319_v49 = vrot.slane %v1318_v41, 1  ;;  %v1359_v51 = vrot.slane %v1358_v42, 1 }
 0x2b3   : > { %v1329_v52 = vrot.slane %v1328_v43, 1  ;;  %v1369_v53 = vrot.slane %v1368_v44, 1 }
 0x2b4   : > { %v1320_v54 = vmax.f32 %v1318_v41, %v1319_v49  ;;  %v1360_v55 = vmax.f32 %v1358_v42, %v1359_v51  ;;  %v1239_v42 = vcombine.high %v5714_v48, %v5714_v48  ;;  %v1283_v49 = vpack.i.b16 %v1237_v40, %v1237_v40  ;;  %v4762_v40 = vld [vmem:[%s6647_s7 + $0x22c] ss:$16 sps:$4 sm:$0xff]  }
 0x2b5   : > { %v1330_v56 = vmax.f32 %v1328_v43, %v1329_v52  ;;  %v1370_v57 = vmax.f32 %v1368_v44, %v1369_v53 }
 0x2b6   : > { %v1321_v58 = vpack.i.bf16 %v1320_v54, %v1320_v54  ;;  %v1361_v59 = vpack.i.bf16 %v1360_v55, %v1360_v55  ;;  %v1290_v52 = vpack.i.b16 %v1239_v42, %v1239_v42  ;;  %v4757_v42 = vld [vmem:[%s6647_s7 + $0x220] ss:$16 sps:$4 sm:$0xff]  }
 0x2b7   : > { %v1331_v61 = vpack.i.bf16 %v1330_v56, %v1330_v56  ;;  %v1371_v62 = vpack.i.bf16 %v1370_v57, %v1370_v57  ;;  %v1288_v57 = vrot.slane %v1283_v49, %v5719_v50  ;;  %v4768_v49 = vld [vmem:[%s6647_s7 + $0x24c] ss:$16 sps:$4 sm:$0xff]  }
 0x2b8   : > { %v1393_v0 = vunpack.c.l.bf16 %v1321_v58  ;;  %v5739_v1 = vunpack.c.l.bf16 %v1361_v59  ;;  %v1295_v46 = vrot.slane %v1290_v52, %v5719_v50  ;;  %v4766_v52 = vld [vmem:[%s6647_s7 + $0x248] ss:$16 sps:$4 sm:$0xff]  }
 0x2b9   : > { %v1394_v2 = vunpack.c.l.bf16 %v1331_v61  ;;  %v5741_v3 = vunpack.c.l.bf16 %v1371_v62 }
 0x2bb   : > { %v1409_v5 = vcombine.low %v1393_v0, %v1394_v2  ;;  %v1411_v6 = vcombine.low %v5739_v1, %v5741_v3 }
 0x2bd   : > { %v1086_v8 = vpop.f32.mrb[12].mxu1  ;;  %v1419_v53 = vrot.slane %v1409_v5, %v5700_v39 }
 0x2be   : > { %v1088_v9 = vpop.f32.mrb[13].mxu1 }
 0x2bf   : > { %v1090_v10 = vpop.f32.mrb[14].mxu1 }
 0x2c0   : > { %v1183_v47 = vpack.c.bf16 %v1090_v10, %v1086_v8  ;;  %v1092_v12 = vpop.f32.mrb[15].mxu1 }
 0x2c1   : > { %v1184_v13 = vpack.c.bf16 %v1092_v12, %v1088_v9 }
 0x2c2   : > { %v1298_v14 = vadd.bf16 %v1260_v45, %v1183_v47 }
 0x2c3   : > { %v1299_v15 = vadd.bf16 %v1267_v11, %v1184_v13 }
 0x2c4   : > { %v1306_v16 = vmax.bf16 %v5177_v22, %v1298_v14 }
 0x2c5   : > { %v1307_v17 = vmax.bf16 %v5177_v22, %v1299_v15 }
 0x2c6   : > { %v1332_v18 = vunpack.i.l.bf16 %v1306_v16  ;;  %v1333_v19 = vunpack.i.h.bf16 %v1306_v16 }
 0x2c7   : > { %v1342_v20 = vunpack.i.l.bf16 %v1307_v17  ;;  %v1343_v21 = vunpack.i.h.bf16 %v1307_v17 }
 0x2c8   : > { %v1334_v23 = vmax.f32 %v1332_v18, %v1333_v19 }
 0x2c9   : > { %v1344_v24 = vmax.f32 %v1342_v20, %v1343_v21 }
 0x2ca   : > { %v1335_v25 = vrot.slane %v1334_v23, 4 }
 0x2cb   : > { %v1345_v26 = vrot.slane %v1344_v24, 4 }
 0x2cc   : > { %v1336_v27 = vmax.f32 %v1334_v23, %v1335_v25 }
 0x2cd   : > { %v1346_v28 = vmax.f32 %v1344_v24, %v1345_v26  ;;  %v1433_v26 = vrot.slane %v1411_v6, %v5700_v39 }
 0x2ce   : > { %v1337_v29 = vrot.slane %v1336_v27, 2 }
 0x2cf   : > { %v1347_v30 = vrot.slane %v1346_v28, 2 }
 0x2d0   : > { %v1338_v31 = vmax.f32 %v1336_v27, %v1337_v29 }
 0x2d1   : > { %v1348_v32 = vmax.f32 %v1346_v28, %v1347_v30 }
 0x2d2   : > { %v1339_v33 = vrot.slane %v1338_v31, 1 }
 0x2d3   : > { %v1349_v34 = vrot.slane %v1348_v32, 1 }
 0x2d4   : > { %v1340_v36 = vmax.f32 %v1338_v31, %v1339_v33  ;;  %v5767_v31 = vsub.s32 1, %v5688_v35 }
 0x2d5   : > { %v1350_v37 = vmax.f32 %v1348_v32, %v1349_v34  ;;  %v1480_v32 = vsub.s32 3, %v5688_v35 }
 0x2d6   : > { %v1341_v38 = vpack.i.bf16 %v1340_v36, %v1340_v36  ;;  %v4754_v36 = vld [vmem:[%s6647_s7 + $0x208] ss:$16 sps:$4 sm:$0xff]  }
 0x2d7   : > { %v1351_v41 = vpack.i.bf16 %v1350_v37, %v1350_v37 }
 0x2d8   : > { %v1395_v43 = vunpack.c.l.bf16 %v1341_v38  ;;  %v4759_v38 = vld [vmem:[%s6647_s7 + $0x224] ss:$16 sps:$4 sm:$0xff]  }
 0x2d9   : > { %v1396_v44 = vunpack.c.l.bf16 %v1351_v41 }
 0x2db   : > { %v1410_v51 = vcombine.low %v1395_v43, %v1396_v44  ;;  %v4760_v43 = vld [vmem:[%s6647_s7 + $0x228] ss:$16 sps:$4 sm:$0xff]   ;;  %v4765_v44 = vld [vmem:[%s6647_s7 + $0x244] ss:$16 sps:$4 sm:$0xff]  }
 0x2dd   : > { %v1426_v54 = vrot.slane %v1410_v51, %v5700_v39  ;;  %v1172_v55 = vpop.f32.mrb[16].mxu1  ;;  %v4763_v51 = vld [vmem:[%s6647_s7 + $0x240] ss:$16 sps:$4 sm:$0xff]  }
 0x2de   : > { %v1174_v56 = vpop.f32.mrb[17].mxu1 }
 0x2df   : > { %v1441_v58 = vcombine.low %v1419_v53, %v1426_v54  ;;  %v1176_v59 = vpop.f32.mrb[18].mxu1  ;;  %v4771_v53 = vld [vmem:[%s6647_s7 + $0x264] ss:$16 sps:$4 sm:$0xff]   ;;  %v4774_v54 = vld [vmem:[%s6647_s7 + $0x26c] ss:$16 sps:$4 sm:$0xff]  }
 0x2e0   : > { %v1187_v60 = vpack.c.bf16 %v1176_v59, %v1172_v55  ;;  %v1178_v61 = vpop.f32.mrb[19].mxu1  ;;  %v4769_v55 = vld [vmem:[%s6647_s7 + $0x260] ss:$16 sps:$4 sm:$0xff]  }
 0x2e1   : > { %v1188_v48 = vpack.c.bf16 %v1178_v61, %v1174_v56  ;;  %v1449_v29 = vrot.slane %v1441_v58, %v5700_v39  ;;  %v4772_v56 = vld [vmem:[%s6647_s7 + $0x268] ss:$16 sps:$4 sm:$0xff]   ;;  %v4780_v58 = vld [vmem:[%s6647_s7 + $0x28c] ss:$16 sps:$4 sm:$0xff]   ;;  %v4775_v59 = vld [vmem:[%s6647_s7 + $0x280] ss:$16 sps:$4 sm:$0xff]  }
 0x2e2   : > { %v1302_v62 = vadd.bf16 %v1288_v57, %v1187_v60  ;;  %v4777_v57 = vld [vmem:[%s6647_s7 + $0x284] ss:$16 sps:$4 sm:$0xff]   ;;  %v4786_v61 = vld [vmem:[%s6647_s7 + $0x2ac] ss:$16 sps:$4 sm:$0xff]  }
 0x2e3   : > { %v1303_v63 = vadd.bf16 %v1295_v46, %v1188_v48  ;;  %v4778_v46 = vld [vmem:[%s6647_s7 + $0x288] ss:$16 sps:$4 sm:$0xff]   ;;  %v4783_v60 = vld [vmem:[%s6647_s7 + $0x2a4] ss:$16 sps:$4 sm:$0xff]   ;;  %v4781_v48 = vld [vmem:[%s6647_s7 + $0x2a0] ss:$16 sps:$4 sm:$0xff]  }
 0x2e4   : > { %v1310_v0 = vmax.bf16 %v5177_v22, %v1302_v62  ;;  %v4784_v62 = vld [vmem:[%s6647_s7 + $0x2a8] ss:$16 sps:$4 sm:$0xff]  }
 0x2e5   : > { %v1311_v2 = vmax.bf16 %v5177_v22, %v1303_v63  ;;  %v4789_v63 = vld [vmem:[%s6647_s7 + $0x2c4] ss:$16 sps:$4 sm:$0xff]  }
 0x2e6   : > { %v1372_v4 = vunpack.i.l.bf16 %v1310_v0  ;;  %v1373_v5 = vunpack.i.h.bf16 %v1310_v0  ;;  %v4792_v0 = vld [vmem:[%s6647_s7 + $0x2cc] ss:$16 sps:$4 sm:$0xff]  }
 0x2e7   : > { %v1382_v7 = vunpack.i.l.bf16 %v1311_v2  ;;  %v1383_v8 = vunpack.i.h.bf16 %v1311_v2  ;;  %v4787_v2 = vld [vmem:[%s6647_s7 + $0x2c0] ss:$16 sps:$4 sm:$0xff]  }
 0x2e8   : > { %v1374_v9 = vmax.f32 %v1372_v4, %v1373_v5  ;;  %v4790_v4 = vld [vmem:[%s6647_s7 + $0x2c8] ss:$16 sps:$4 sm:$0xff]   ;;  %v4795_v5 = vld [vmem:[%s6647_s7 + $0x2e4] ss:$16 sps:$4 sm:$0xff]  }
 0x2e9   : > { %v1384_v45 = vmax.f32 %v1382_v7, %v1383_v8  ;;  %v4798_v7 = vld [vmem:[%s6647_s7 + $0x2ec] ss:$16 sps:$4 sm:$0xff]   ;;  %v4793_v8 = vld [vmem:[%s6647_s7 + $0x2e0] ss:$16 sps:$4 sm:$0xff]  }
 0x2ea   : > { %v1375_v10 = vrot.slane %v1374_v9, 4 }
 0x2eb   : > { %v1385_v11 = vrot.slane %v1384_v45, 4 }
 0x2ec   : > { %v1376_v47 = vmax.f32 %v1374_v9, %v1375_v10  ;;  %v4796_v9 = vld [vmem:[%s6647_s7 + $0x2e8] ss:$16 sps:$4 sm:$0xff]   ;;  %v4804_v10 = vld [vmem:[%s6647_s7 + $0x30c] ss:$16 sps:$4 sm:$0xff]  }
 0x2ed   : > { %v1386_v12 = vmax.f32 %v1384_v45, %v1385_v11  ;;  %v4801_v45 = vld [vmem:[%s6647_s7 + $0x304] ss:$16 sps:$4 sm:$0xff]   ;;  %v4799_v11 = vld [vmem:[%s6647_s7 + $0x300] ss:$16 sps:$4 sm:$0xff]  }
 0x2ee   : > { %v1377_v13 = vrot.slane %v1376_v47, 2 }
 0x2ef   : > { %v1387_v14 = vrot.slane %v1386_v12, 2 }
 0x2f0   : > { %v1378_v15 = vmax.f32 %v1376_v47, %v1377_v13  ;;  %v4802_v47 = vld [vmem:[%s6647_s7 + $0x308] ss:$16 sps:$4 sm:$0xff]   ;;  %v4810_v13 = vld [vmem:[%s6647_s7 + $0x32c] ss:$16 sps:$4 sm:$0xff]  }
 0x2f1   : > { %v1388_v16 = vmax.f32 %v1386_v12, %v1387_v14  ;;  %v4807_v12 = vld [vmem:[%s6647_s7 + $0x324] ss:$16 sps:$4 sm:$0xff]   ;;  %v4805_v14 = vld [vmem:[%s6647_s7 + $0x320] ss:$16 sps:$4 sm:$0xff]  }
 0x2f2   : > { %v1379_v17 = vrot.slane %v1378_v15, 1 }
 0x2f3   : > { %v1389_v18 = vrot.slane %v1388_v16, 1 }
 0x2f4   : > { %v1380_v19 = vmax.f32 %v1378_v15, %v1379_v17  ;;  %v4808_v15 = vld [vmem:[%s6647_s7 + $0x328] ss:$16 sps:$4 sm:$0xff]   ;;  %v4816_v17 = vld [vmem:[%s6647_s7 + $0x34c] ss:$16 sps:$4 sm:$0xff]  }
 0x2f5   : > { %v1390_v20 = vmax.f32 %v1388_v16, %v1389_v18  ;;  %v4813_v16 = vld [vmem:[%s6647_s7 + $0x344] ss:$16 sps:$4 sm:$0xff]   ;;  %v4811_v18 = vld [vmem:[%s6647_s7 + $0x340] ss:$16 sps:$4 sm:$0xff]  }
 0x2f6   : > { %v1381_v21 = vpack.i.bf16 %v1380_v19, %v1380_v19  ;;  %v4814_v19 = vld [vmem:[%s6647_s7 + $0x348] ss:$16 sps:$4 sm:$0xff]  }
 0x2f7   : > { %v1391_v22 = vpack.i.bf16 %v1390_v20, %v1390_v20  ;;  %v4819_v20 = vld [vmem:[%s6647_s7 + $0x364] ss:$16 sps:$4 sm:$0xff]  }
 0x2f8   : > { %v1399_v23 = vunpack.c.l.bf16 %v1381_v21  ;;  %v4822_v21 = vld [vmem:[%s6647_s7 + $0x36c] ss:$16 sps:$4 sm:$0xff]  }
 0x2f9   : > { %v1400_v24 = vunpack.c.l.bf16 %v1391_v22  ;;  %v4817_v22 = vld [vmem:[%s6647_s7 + $0x360] ss:$16 sps:$4 sm:$0xff]  }
 0x2fb   : > { %v1412_v25 = vcombine.low %v1399_v23, %v1400_v24  ;;  %v4820_v23 = vld [vmem:[%s6647_s7 + $0x368] ss:$16 sps:$4 sm:$0xff]   ;;  %v4825_v24 = vld [vmem:[%s6647_s7 + $0x384] ss:$16 sps:$4 sm:$0xff]  }
 0x2fd   : > { %v1440_v27 = vrot.slane %v1412_v25, %v5700_v39  ;;  %v4828_v25 = vld [vmem:[%s6647_s7 + $0x38c] ss:$16 sps:$4 sm:$0xff]  }
 0x2ff   : > { %v1442_v28 = vcombine.low %v1433_v26, %v1440_v27  ;;  %v4823_v26 = vld [vmem:[%s6647_s7 + $0x380] ss:$16 sps:$4 sm:$0xff]   ;;  %v4826_v27 = vld [vmem:[%s6647_s7 + $0x388] ss:$16 sps:$4 sm:$0xff]  }
 0x301   : > { %v1456_v30 = vrot.slane %v1442_v28, %v5700_v39  ;;  %v4751_v39 = vld [vmem:[%s6647_s7 + $0x200] ss:$16 sps:$4 sm:$0xff]   ;;  %v4831_v28 = vld [vmem:[%s6647_s7 + $0x3a4] ss:$16 sps:$4 sm:$0xff]  }
 0x303   : > { %v5770_v33 = vcombine.low %v1449_v29, %v1456_v30  ;;  %v4834_v29 = vld [vmem:[%s6647_s7 + $0x3ac] ss:$16 sps:$4 sm:$0xff]   ;;  %v4829_v30 = vld [vmem:[%s6647_s7 + $0x3a0] ss:$16 sps:$4 sm:$0xff]  }
 0x305   : > { %v1473_v34 = vrot.slane %v5770_v33, %v5767_v31  ;;  %v1469_v1 = vrot.slane %v5770_v33, %v5719_v50  ;;  %v1481_v3 = vrot.slane %v5770_v33, %v1480_v32 }
 0x307   : > { %v1507_v6 = vpack.c.bf16 %v1473_v34, %v1473_v34  ;;  %v1506_v37 = vpack.c.bf16 %v1469_v1, %v1469_v1  ;;  %v1509_v41 = vpack.c.bf16 %v1481_v3, %v1481_v3  ;;  %v4832_v34 = vld [vmem:[%s6647_s7 + $0x3a8] ss:$16 sps:$4 sm:$0xff]   ;;  %v4837_v1 = vld [vmem:[%s6647_s7 + $0x3c4] ss:$16 sps:$4 sm:$0xff]   ;;  %v4840_v3 = vld [vmem:[%s6647_s7 + $0x3cc] ss:$16 sps:$4 sm:$0xff]  }
 0x309   : > { %3104 = vmatprep.mubr.bf16.mxu0 %v1507_v6  ;;  %3268 = vmatprep.mubr.bf16.mxu1 %v1507_v6  ;;  %v4835_v6 = vld [vmem:[%s6647_s7 + $0x3c0] ss:$16 sps:$4 sm:$0xff]  }
 0x30a   : > { %3105 = vmatmul.mubr.bf16.vlgmr.msra.gmra.mrb[4].mxu0 %v1506_v37  ;;  %3269 = vmatmul.mubr.bf16.vlgmr.msra.gmra.mrb[20].mxu1 %v1506_v37  ;;  %v4846_v37 = vld [vmem:[%s6647_s7 + $0x3ec] ss:$16 sps:$4 sm:$0xff]  }
 0x30b   : > { %3114 = vmatpush1.bf16.msra.mxu0 %v4751_v39  ;;  %3278 = vmatpush1.bf16.msra.mxu1 %v4754_v36  ;;  %v4838_v39 = vld [vmem:[%s6647_s7 + $0x3c8] ss:$16 sps:$4 sm:$0xff]   ;;  %v4843_v36 = vld [vmem:[%s6647_s7 + $0x3e4] ss:$16 sps:$4 sm:$0xff]  }
 0x30c   : > { %3145 = vmatprep.mubr.bf16.mxu0 %v1509_v41  ;;  %3309 = vmatprep.mubr.bf16.mxu1 %v1509_v41  ;;  %v4841_v41 = vld [vmem:[%s6647_s7 + $0x3e0] ss:$16 sps:$4 sm:$0xff]  }
 0x30d   : > { %3115 = vmatprep.subr.bf16.mxu0 %v4759_v38  ;;  %3279 = vmatprep.subr.bf16.mxu1 %v4762_v40  ;;  %v1476_v38 = vsub.s32 2, %v5688_v35  ;;  %v1488_v40 = vsub.s32 5, %v5688_v35 }
 0x30f   : > { %3116 = vmatpush1.bf16.msra.mxu0 %v4757_v42  ;;  %3280 = vmatpush1.bf16.msra.mxu1 %v4760_v43  ;;  %v4844_v42 = vld [vmem:[%s6647_s7 + $0x3e8] ss:$16 sps:$4 sm:$0xff]   ;;  %v1477_v43 = vrot.slane %v5770_v33, %v1476_v38 }
 0x310   : > { %3117 = vmatprep.subr.bf16.mxu0 %v4765_v44  ;;  %3281 = vmatprep.subr.bf16.mxu1 %v4768_v49  ;;  %v4849_v44 = vld [vmem:[%s6647_s7 + $0x404] ss:$16 sps:$4 sm:$0xff]   ;;  %v4852_v49 = vld [vmem:[%s6647_s7 + $0x40c] ss:$16 sps:$4 sm:$0xff]  }
 0x313   : > { %3118 = vmatpush1.bf16.msra.mxu0 %v4763_v51  ;;  %3282 = vmatpush1.bf16.msra.mxu1 %v4766_v52  ;;  %v1489_v51 = vrot.slane %v5770_v33, %v1488_v40  ;;  %v4847_v52 = vld [vmem:[%s6647_s7 + $0x400] ss:$16 sps:$4 sm:$0xff]   ;;  %v4922_v40 = vld [vmem:[%s6647_s7 + $0x588] ss:$16 sps:$4 sm:$0xff]  }
 0x314   : > { %3119 = vmatprep.subr.bf16.mxu0 %v4771_v53  ;;  %3283 = vmatprep.subr.bf16.mxu1 %v4774_v54  ;;  %v1508_v53 = vpack.c.bf16 %v1477_v43, %v1477_v43  ;;  %v4850_v54 = vld [vmem:[%s6647_s7 + $0x408] ss:$16 sps:$4 sm:$0xff]   ;;  %v4925_v43 = vld [vmem:[%s6647_s7 + $0x5a0] ss:$16 sps:$4 sm:$0xff]  }
 0x317   : > { %3120 = vmatpush1.bf16.msra.mxu0 %v4769_v55  ;;  %3284 = vmatpush1.bf16.msra.mxu1 %v4772_v56  ;;  %v1511_v55 = vpack.c.bf16 %v1489_v51, %v1489_v51  ;;  %v4855_v56 = vld [vmem:[%s6647_s7 + $0x424] ss:$16 sps:$4 sm:$0xff]   ;;  %v4936_v51 = vld [vmem:[%s6647_s7 + $0x5cc] ss:$16 sps:$4 sm:$0xff]  }
 0x318   : > { %3121 = vmatprep.subr.bf16.mxu0 %v4777_v57  ;;  %3285 = vmatprep.subr.bf16.mxu1 %v4780_v58  ;;  %v4858_v57 = vld [vmem:[%s6647_s7 + $0x42c] ss:$16 sps:$4 sm:$0xff]   ;;  %v4853_v58 = vld [vmem:[%s6647_s7 + $0x420] ss:$16 sps:$4 sm:$0xff]  }
 0x31b   : > { %3122 = vmatpush1.bf16.msra.mxu0 %v4775_v59  ;;  %3286 = vmatpush1.bf16.msra.mxu1 %v4778_v46  ;;  %v4856_v59 = vld [vmem:[%s6647_s7 + $0x428] ss:$16 sps:$4 sm:$0xff]   ;;  %v4861_v46 = vld [vmem:[%s6647_s7 + $0x444] ss:$16 sps:$4 sm:$0xff]  }
 0x31c   : > { %3123 = vmatprep.subr.bf16.mxu0 %v4783_v60  ;;  %3287 = vmatprep.subr.bf16.mxu1 %v4786_v61  ;;  %v4864_v60 = vld [vmem:[%s6647_s7 + $0x44c] ss:$16 sps:$4 sm:$0xff]   ;;  %v4859_v61 = vld [vmem:[%s6647_s7 + $0x440] ss:$16 sps:$4 sm:$0xff]  }
 0x31f   : > { %3124 = vmatpush1.bf16.msra.mxu0 %v4781_v48  ;;  %3288 = vmatpush1.bf16.msra.mxu1 %v4784_v62  ;;  %v4862_v48 = vld [vmem:[%s6647_s7 + $0x448] ss:$16 sps:$4 sm:$0xff]   ;;  %v4867_v62 = vld [vmem:[%s6647_s7 + $0x464] ss:$16 sps:$4 sm:$0xff]  }
 0x320   : > { %3125 = vmatprep.subr.bf16.mxu0 %v4789_v63  ;;  %3289 = vmatprep.subr.bf16.mxu1 %v4792_v0  ;;  %v4870_v63 = vld [vmem:[%s6647_s7 + $0x46c] ss:$16 sps:$4 sm:$0xff]   ;;  %v4865_v0 = vld [vmem:[%s6647_s7 + $0x460] ss:$16 sps:$4 sm:$0xff]  }
 0x323   : > { %3126 = vmatpush1.bf16.msra.mxu0 %v4787_v2  ;;  %3290 = vmatpush1.bf16.msra.mxu1 %v4790_v4  ;;  %v4868_v2 = vld [vmem:[%s6647_s7 + $0x468] ss:$16 sps:$4 sm:$0xff]   ;;  %v4873_v4 = vld [vmem:[%s6647_s7 + $0x484] ss:$16 sps:$4 sm:$0xff]  }
 0x324   : > { %3127 = vmatprep.subr.bf16.mxu0 %v4795_v5  ;;  %3291 = vmatprep.subr.bf16.mxu1 %v4798_v7  ;;  %v4876_v5 = vld [vmem:[%s6647_s7 + $0x48c] ss:$16 sps:$4 sm:$0xff]   ;;  %v4871_v7 = vld [vmem:[%s6647_s7 + $0x480] ss:$16 sps:$4 sm:$0xff]  }
 0x327   : > { %3128 = vmatpush1.bf16.msra.mxu0 %v4793_v8  ;;  %3292 = vmatpush1.bf16.msra.mxu1 %v4796_v9  ;;  %v4874_v8 = vld [vmem:[%s6647_s7 + $0x488] ss:$16 sps:$4 sm:$0xff]   ;;  %v4879_v9 = vld [vmem:[%s6647_s7 + $0x4a4] ss:$16 sps:$4 sm:$0xff]  }
 0x328   : > { %3129 = vmatprep.subr.bf16.mxu0 %v4801_v45  ;;  %3293 = vmatprep.subr.bf16.mxu1 %v4804_v10  ;;  %v4882_v45 = vld [vmem:[%s6647_s7 + $0x4ac] ss:$16 sps:$4 sm:$0xff]   ;;  %v4877_v10 = vld [vmem:[%s6647_s7 + $0x4a0] ss:$16 sps:$4 sm:$0xff]  }
 0x32b   : > { %3130 = vmatpush1.bf16.msra.mxu0 %v4799_v11  ;;  %3294 = vmatpush1.bf16.msra.mxu1 %v4802_v47  ;;  %v4880_v11 = vld [vmem:[%s6647_s7 + $0x4a8] ss:$16 sps:$4 sm:$0xff]   ;;  %v4885_v47 = vld [vmem:[%s6647_s7 + $0x4c4] ss:$16 sps:$4 sm:$0xff]  }
 0x32c   : > { %3131 = vmatprep.subr.bf16.mxu0 %v4807_v12  ;;  %3295 = vmatprep.subr.bf16.mxu1 %v4810_v13  ;;  %v4888_v12 = vld [vmem:[%s6647_s7 + $0x4cc] ss:$16 sps:$4 sm:$0xff]   ;;  %v4883_v13 = vld [vmem:[%s6647_s7 + $0x4c0] ss:$16 sps:$4 sm:$0xff]  }
 0x32f   : > { %3132 = vmatpush1.bf16.msra.mxu0 %v4805_v14  ;;  %3296 = vmatpush1.bf16.msra.mxu1 %v4808_v15  ;;  %v4886_v14 = vld [vmem:[%s6647_s7 + $0x4c8] ss:$16 sps:$4 sm:$0xff]   ;;  %v4891_v15 = vld [vmem:[%s6647_s7 + $0x4e4] ss:$16 sps:$4 sm:$0xff]  }
 0x330   : > { %3133 = vmatprep.subr.bf16.mxu0 %v4813_v16  ;;  %3297 = vmatprep.subr.bf16.mxu1 %v4816_v17  ;;  %v4894_v16 = vld [vmem:[%s6647_s7 + $0x4ec] ss:$16 sps:$4 sm:$0xff]   ;;  %v4889_v17 = vld [vmem:[%s6647_s7 + $0x4e0] ss:$16 sps:$4 sm:$0xff]  }
 0x333   : > { %3134 = vmatpush1.bf16.msra.mxu0 %v4811_v18  ;;  %3298 = vmatpush1.bf16.msra.mxu1 %v4814_v19  ;;  %v4892_v18 = vld [vmem:[%s6647_s7 + $0x4e8] ss:$16 sps:$4 sm:$0xff]   ;;  %v4897_v19 = vld [vmem:[%s6647_s7 + $0x504] ss:$16 sps:$4 sm:$0xff]  }
 0x334   : > { %3135 = vmatprep.subr.bf16.mxu0 %v4819_v20  ;;  %3299 = vmatprep.subr.bf16.mxu1 %v4822_v21  ;;  %v4900_v20 = vld [vmem:[%s6647_s7 + $0x50c] ss:$16 sps:$4 sm:$0xff]   ;;  %v4895_v21 = vld [vmem:[%s6647_s7 + $0x500] ss:$16 sps:$4 sm:$0xff]  }
 0x337   : > { %3136 = vmatpush1.bf16.msra.mxu0 %v4817_v22  ;;  %3300 = vmatpush1.bf16.msra.mxu1 %v4820_v23  ;;  %v4898_v22 = vld [vmem:[%s6647_s7 + $0x508] ss:$16 sps:$4 sm:$0xff]   ;;  %v4903_v23 = vld [vmem:[%s6647_s7 + $0x524] ss:$16 sps:$4 sm:$0xff]  }
 0x338   : > { %3137 = vmatprep.subr.bf16.mxu0 %v4825_v24  ;;  %3301 = vmatprep.subr.bf16.mxu1 %v4828_v25  ;;  %v4906_v24 = vld [vmem:[%s6647_s7 + $0x52c] ss:$16 sps:$4 sm:$0xff]   ;;  %v4901_v25 = vld [vmem:[%s6647_s7 + $0x520] ss:$16 sps:$4 sm:$0xff]  }
 0x33b   : > { %3138 = vmatpush1.bf16.msra.mxu0 %v4823_v26  ;;  %3302 = vmatpush1.bf16.msra.mxu1 %v4826_v27  ;;  %v4904_v26 = vld [vmem:[%s6647_s7 + $0x528] ss:$16 sps:$4 sm:$0xff]   ;;  %v4909_v27 = vld [vmem:[%s6647_s7 + $0x544] ss:$16 sps:$4 sm:$0xff]  }
 0x33c   : > { %3139 = vmatprep.subr.bf16.mxu0 %v4831_v28  ;;  %3303 = vmatprep.subr.bf16.mxu1 %v4834_v29  ;;  %v4912_v28 = vld [vmem:[%s6647_s7 + $0x54c] ss:$16 sps:$4 sm:$0xff]   ;;  %v4907_v29 = vld [vmem:[%s6647_s7 + $0x540] ss:$16 sps:$4 sm:$0xff]  }
 0x33f   : > { %3140 = vmatpush1.bf16.msra.mxu0 %v4829_v30  ;;  %3304 = vmatpush1.bf16.msra.mxu1 %v4832_v34  ;;  %v4910_v30 = vld [vmem:[%s6647_s7 + $0x548] ss:$16 sps:$4 sm:$0xff]   ;;  %v4915_v34 = vld [vmem:[%s6647_s7 + $0x564] ss:$16 sps:$4 sm:$0xff]  }
 0x340   : > { %3141 = vmatprep.subr.bf16.mxu0 %v4837_v1  ;;  %3305 = vmatprep.subr.bf16.mxu1 %v4840_v3  ;;  %v4918_v1 = vld [vmem:[%s6647_s7 + $0x56c] ss:$16 sps:$4 sm:$0xff]   ;;  %v4913_v3 = vld [vmem:[%s6647_s7 + $0x560] ss:$16 sps:$4 sm:$0xff]  }
 0x343   : > { %3142 = vmatpush1.bf16.msra.mxu0 %v4835_v6  ;;  %3306 = vmatpush1.bf16.msra.mxu1 %v4838_v39  ;;  %v4916_v6 = vld [vmem:[%s6647_s7 + $0x568] ss:$16 sps:$4 sm:$0xff]   ;;  %v4921_v39 = vld [vmem:[%s6647_s7 + $0x584] ss:$16 sps:$4 sm:$0xff]  }
 0x344   : > { %3143 = vmatprep.subr.bf16.mxu0 %v4843_v36  ;;  %3307 = vmatprep.subr.bf16.mxu1 %v4846_v37  ;;  %v4924_v36 = vld [vmem:[%s6647_s7 + $0x58c] ss:$16 sps:$4 sm:$0xff]   ;;  %v4919_v37 = vld [vmem:[%s6647_s7 + $0x580] ss:$16 sps:$4 sm:$0xff]  }
 0x347   : > { %3144 = vmatpush1.bf16.msra.mxu0 %v4841_v41  ;;  %3308 = vmatpush1.bf16.msra.mxu1 %v4844_v42  ;;  %v4927_v41 = vld [vmem:[%s6647_s7 + $0x5a4] ss:$16 sps:$4 sm:$0xff]   ;;  %v4930_v42 = vld [vmem:[%s6647_s7 + $0x5ac] ss:$16 sps:$4 sm:$0xff]  }
 0x348   : > { %3154 = vmatprep.subr.bf16.mxu0 %v4849_v44  ;;  %3318 = vmatprep.subr.bf16.mxu1 %v4852_v49  ;;  %v4928_v44 = vld [vmem:[%s6647_s7 + $0x5a8] ss:$16 sps:$4 sm:$0xff]   ;;  %v4933_v49 = vld [vmem:[%s6647_s7 + $0x5c4] ss:$16 sps:$4 sm:$0xff]  }
 0x34a   : > { %3146 = vmatmul.mubr.bf16.vlgmr.msra.gmra.mrb[4].mxu0 %v1508_v53  ;;  %3310 = vmatmul.mubr.bf16.vlgmr.msra.gmra.mrb[20].mxu1 %v1508_v53  ;;  %v4934_v53 = vld [vmem:[%s6647_s7 + $0x5c8] ss:$16 sps:$4 sm:$0xff]  }
 0x34b   : > { %3155 = vmatpush1.bf16.msra.mxu0 %v4847_v52  ;;  %3186 = vmatprep.mubr.bf16.mxu0 %v1511_v55  ;;  %v4931_v52 = vld [vmem:[%s6647_s7 + $0x5c0] ss:$16 sps:$4 sm:$0xff]  }
 0x34c   : > { %3319 = vmatpush1.bf16.msra.mxu1 %v4850_v54  ;;  %3350 = vmatprep.mubr.bf16.mxu1 %v1511_v55  ;;  %v4939_v54 = vld [vmem:[%s6647_s7 + $0x5e4] ss:$16 sps:$4 sm:$0xff]   ;;  %v1484_v55 = vsub.s32 4, %v5688_v35 }
 0x34d   : > { %3156 = vmatprep.subr.bf16.mxu0 %v4855_v56  ;;  %3320 = vmatprep.subr.bf16.mxu1 %v4858_v57  ;;  %v4942_v56 = vld [vmem:[%s6647_s7 + $0x5ec] ss:$16 sps:$4 sm:$0xff]   ;;  %v1496_v57 = vsub.s32 7, %v5688_v35 }
 0x34f   : > { %3157 = vmatpush1.bf16.msra.mxu0 %v4853_v58  ;;  %v4937_v58 = vld [vmem:[%s6647_s7 + $0x5e0] ss:$16 sps:$4 sm:$0xff]  }
 0x350   : > { %3321 = vmatpush1.bf16.msra.mxu1 %v4856_v59  ;;  %3158 = vmatprep.subr.bf16.mxu0 %v4861_v46  ;;  %v4940_v59 = vld [vmem:[%s6647_s7 + $0x5e8] ss:$16 sps:$4 sm:$0xff]   ;;  %v1485_v46 = vrot.slane %v5770_v33, %v1484_v55  ;;  %v5020_v55 = vld [vmem:[%s6647_s7 + $0x78c] ss:$16 sps:$4 sm:$0xff]  }
 0x351   : > { %3322 = vmatprep.subr.bf16.mxu1 %v4864_v60  ;;  %v4945_v60 = vld [vmem:[%s6647_s7 + $0x604] ss:$16 sps:$4 sm:$0xff]  }
 0x353   : > { %3159 = vmatpush1.bf16.msra.mxu0 %v4859_v61  ;;  %v4948_v61 = vld [vmem:[%s6647_s7 + $0x60c] ss:$16 sps:$4 sm:$0xff]  }
 0x354   : > { %3323 = vmatpush1.bf16.msra.mxu1 %v4862_v48  ;;  %3160 = vmatprep.subr.bf16.mxu0 %v4867_v62  ;;  %v1497_v48 = vrot.slane %v5770_v33, %v1496_v57  ;;  %v4943_v62 = vld [vmem:[%s6647_s7 + $0x600] ss:$16 sps:$4 sm:$0xff]   ;;  %v5018_v57 = vld [vmem:[%s6647_s7 + $0x788] ss:$16 sps:$4 sm:$0xff]  }
 0x355   : > { %3324 = vmatprep.subr.bf16.mxu1 %v4870_v63  ;;  %v1510_v63 = vpack.c.bf16 %v1485_v46, %v1485_v46  ;;  %v5021_v46 = vld [vmem:[%s6647_s7 + $0x7a0] ss:$16 sps:$4 sm:$0xff]  }
 0x357   : > { %3161 = vmatpush1.bf16.msra.mxu0 %v4865_v0  ;;  %v4946_v0 = vld [vmem:[%s6647_s7 + $0x608] ss:$16 sps:$4 sm:$0xff]  }
 0x358   : > { %3325 = vmatpush1.bf16.msra.mxu1 %v4868_v2  ;;  %3162 = vmatprep.subr.bf16.mxu0 %v4873_v4  ;;  %v4951_v2 = vld [vmem:[%s6647_s7 + $0x624] ss:$16 sps:$4 sm:$0xff]   ;;  %v1513_v4 = vpack.c.bf16 %v1497_v48, %v1497_v48  ;;  %v5032_v48 = vld [vmem:[%s6647_s7 + $0x7cc] ss:$16 sps:$4 sm:$0xff]  }
 0x359   : > { %3326 = vmatprep.subr.bf16.mxu1 %v4876_v5  ;;  %v4954_v5 = vld [vmem:[%s6647_s7 + $0x62c] ss:$16 sps:$4 sm:$0xff]  }
 0x35b   : > { %3163 = vmatpush1.bf16.msra.mxu0 %v4871_v7  ;;  %v4949_v7 = vld [vmem:[%s6647_s7 + $0x620] ss:$16 sps:$4 sm:$0xff]  }
 0x35c   : > { %3327 = vmatpush1.bf16.msra.mxu1 %v4874_v8  ;;  %3164 = vmatprep.subr.bf16.mxu0 %v4879_v9  ;;  %v4952_v8 = vld [vmem:[%s6647_s7 + $0x628] ss:$16 sps:$4 sm:$0xff]   ;;  %v4957_v9 = vld [vmem:[%s6647_s7 + $0x644] ss:$16 sps:$4 sm:$0xff]  }
 0x35d   : > { %3328 = vmatprep.subr.bf16.mxu1 %v4882_v45  ;;  %v4960_v45 = vld [vmem:[%s6647_s7 + $0x64c] ss:$16 sps:$4 sm:$0xff]  }
 0x35f   : > { %3165 = vmatpush1.bf16.msra.mxu0 %v4877_v10  ;;  %v4955_v10 = vld [vmem:[%s6647_s7 + $0x640] ss:$16 sps:$4 sm:$0xff]  }
 0x360   : > { %3329 = vmatpush1.bf16.msra.mxu1 %v4880_v11  ;;  %3166 = vmatprep.subr.bf16.mxu0 %v4885_v47  ;;  %v4958_v11 = vld [vmem:[%s6647_s7 + $0x648] ss:$16 sps:$4 sm:$0xff]   ;;  %v4963_v47 = vld [vmem:[%s6647_s7 + $0x664] ss:$16 sps:$4 sm:$0xff]  }
 0x361   : > { %3330 = vmatprep.subr.bf16.mxu1 %v4888_v12  ;;  %v4966_v12 = vld [vmem:[%s6647_s7 + $0x66c] ss:$16 sps:$4 sm:$0xff]  }
 0x363   : > { %3167 = vmatpush1.bf16.msra.mxu0 %v4883_v13  ;;  %v4961_v13 = vld [vmem:[%s6647_s7 + $0x660] ss:$16 sps:$4 sm:$0xff]  }
 0x364   : > { %3331 = vmatpush1.bf16.msra.mxu1 %v4886_v14  ;;  %3168 = vmatprep.subr.bf16.mxu0 %v4891_v15  ;;  %v4964_v14 = vld [vmem:[%s6647_s7 + $0x668] ss:$16 sps:$4 sm:$0xff]   ;;  %v4969_v15 = vld [vmem:[%s6647_s7 + $0x684] ss:$16 sps:$4 sm:$0xff]  }
 0x365   : > { %3332 = vmatprep.subr.bf16.mxu1 %v4894_v16  ;;  %v4972_v16 = vld [vmem:[%s6647_s7 + $0x68c] ss:$16 sps:$4 sm:$0xff]  }
 0x367   : > { %3169 = vmatpush1.bf16.msra.mxu0 %v4889_v17  ;;  %v4967_v17 = vld [vmem:[%s6647_s7 + $0x680] ss:$16 sps:$4 sm:$0xff]  }
 0x368   : > { %3333 = vmatpush1.bf16.msra.mxu1 %v4892_v18  ;;  %3170 = vmatprep.subr.bf16.mxu0 %v4897_v19  ;;  %v4970_v18 = vld [vmem:[%s6647_s7 + $0x688] ss:$16 sps:$4 sm:$0xff]   ;;  %v4975_v19 = vld [vmem:[%s6647_s7 + $0x6a4] ss:$16 sps:$4 sm:$0xff]  }
 0x369   : > { %3334 = vmatprep.subr.bf16.mxu1 %v4900_v20  ;;  %v4978_v20 = vld [vmem:[%s6647_s7 + $0x6ac] ss:$16 sps:$4 sm:$0xff]  }
 0x36b   : > { %3171 = vmatpush1.bf16.msra.mxu0 %v4895_v21  ;;  %v4973_v21 = vld [vmem:[%s6647_s7 + $0x6a0] ss:$16 sps:$4 sm:$0xff]  }
 0x36c   : > { %3335 = vmatpush1.bf16.msra.mxu1 %v4898_v22  ;;  %3172 = vmatprep.subr.bf16.mxu0 %v4903_v23  ;;  %v4976_v22 = vld [vmem:[%s6647_s7 + $0x6a8] ss:$16 sps:$4 sm:$0xff]   ;;  %v4981_v23 = vld [vmem:[%s6647_s7 + $0x6c4] ss:$16 sps:$4 sm:$0xff]  }
 0x36d   : > { %3336 = vmatprep.subr.bf16.mxu1 %v4906_v24  ;;  %v4984_v24 = vld [vmem:[%s6647_s7 + $0x6cc] ss:$16 sps:$4 sm:$0xff]  }
 0x36f   : > { %3173 = vmatpush1.bf16.msra.mxu0 %v4901_v25  ;;  %v4979_v25 = vld [vmem:[%s6647_s7 + $0x6c0] ss:$16 sps:$4 sm:$0xff]  }
 0x370   : > { %3337 = vmatpush1.bf16.msra.mxu1 %v4904_v26  ;;  %3174 = vmatprep.subr.bf16.mxu0 %v4909_v27  ;;  %v4982_v26 = vld [vmem:[%s6647_s7 + $0x6c8] ss:$16 sps:$4 sm:$0xff]   ;;  %v4987_v27 = vld [vmem:[%s6647_s7 + $0x6e4] ss:$16 sps:$4 sm:$0xff]  }
 0x371   : > { %3338 = vmatprep.subr.bf16.mxu1 %v4912_v28  ;;  %v4990_v28 = vld [vmem:[%s6647_s7 + $0x6ec] ss:$16 sps:$4 sm:$0xff]  }
 0x373   : > { %3175 = vmatpush1.bf16.msra.mxu0 %v4907_v29  ;;  %v4985_v29 = vld [vmem:[%s6647_s7 + $0x6e0] ss:$16 sps:$4 sm:$0xff]  }
 0x374   : > { %3339 = vmatpush1.bf16.msra.mxu1 %v4910_v30  ;;  %3176 = vmatprep.subr.bf16.mxu0 %v4915_v34  ;;  %v4988_v30 = vld [vmem:[%s6647_s7 + $0x6e8] ss:$16 sps:$4 sm:$0xff]   ;;  %v4993_v34 = vld [vmem:[%s6647_s7 + $0x704] ss:$16 sps:$4 sm:$0xff]  }
 0x375   : > { %3340 = vmatprep.subr.bf16.mxu1 %v4918_v1  ;;  %v4996_v1 = vld [vmem:[%s6647_s7 + $0x70c] ss:$16 sps:$4 sm:$0xff]  }
 0x377   : > { %3177 = vmatpush1.bf16.msra.mxu0 %v4913_v3  ;;  %v4991_v3 = vld [vmem:[%s6647_s7 + $0x700] ss:$16 sps:$4 sm:$0xff]  }
 0x378   : > { %3341 = vmatpush1.bf16.msra.mxu1 %v4916_v6  ;;  %3178 = vmatprep.subr.bf16.mxu0 %v4921_v39  ;;  %v4994_v6 = vld [vmem:[%s6647_s7 + $0x708] ss:$16 sps:$4 sm:$0xff]   ;;  %v4999_v39 = vld [vmem:[%s6647_s7 + $0x724] ss:$16 sps:$4 sm:$0xff]  }
 0x379   : > { %3342 = vmatprep.subr.bf16.mxu1 %v4924_v36  ;;  %v5002_v36 = vld [vmem:[%s6647_s7 + $0x72c] ss:$16 sps:$4 sm:$0xff]  }
 0x37b   : > { %3179 = vmatpush1.bf16.msra.mxu0 %v4919_v37  ;;  %v4997_v37 = vld [vmem:[%s6647_s7 + $0x720] ss:$16 sps:$4 sm:$0xff]  }
 0x37c   : > { %3343 = vmatpush1.bf16.msra.mxu1 %v4922_v40  ;;  %3180 = vmatprep.subr.bf16.mxu0 %v4927_v41  ;;  %v5000_v40 = vld [vmem:[%s6647_s7 + $0x728] ss:$16 sps:$4 sm:$0xff]   ;;  %v5005_v41 = vld [vmem:[%s6647_s7 + $0x744] ss:$16 sps:$4 sm:$0xff]  }
 0x37d   : > { %3344 = vmatprep.subr.bf16.mxu1 %v4930_v42  ;;  %v5008_v42 = vld [vmem:[%s6647_s7 + $0x74c] ss:$16 sps:$4 sm:$0xff]  }
 0x37f   : > { %3181 = vmatpush1.bf16.msra.mxu0 %v4925_v43  ;;  %v5003_v43 = vld [vmem:[%s6647_s7 + $0x740] ss:$16 sps:$4 sm:$0xff]  }
 0x380   : > { %3345 = vmatpush1.bf16.msra.mxu1 %v4928_v44  ;;  %3182 = vmatprep.subr.bf16.mxu0 %v4933_v49  ;;  %v5006_v44 = vld [vmem:[%s6647_s7 + $0x748] ss:$16 sps:$4 sm:$0xff]   ;;  %v5011_v49 = vld [vmem:[%s6647_s7 + $0x764] ss:$16 sps:$4 sm:$0xff]  }
 0x381   : > { %3346 = vmatprep.subr.bf16.mxu1 %v4936_v51  ;;  %v5014_v51 = vld [vmem:[%s6647_s7 + $0x76c] ss:$16 sps:$4 sm:$0xff]  }
 0x383   : > { %3183 = vmatpush1.bf16.msra.mxu0 %v4931_v52  ;;  %v5009_v52 = vld [vmem:[%s6647_s7 + $0x760] ss:$16 sps:$4 sm:$0xff]  }
 0x384   : > { %3347 = vmatpush1.bf16.msra.mxu1 %v4934_v53  ;;  %3184 = vmatprep.subr.bf16.mxu0 %v4939_v54  ;;  %v5012_v53 = vld [vmem:[%s6647_s7 + $0x768] ss:$16 sps:$4 sm:$0xff]   ;;  %v5017_v54 = vld [vmem:[%s6647_s7 + $0x784] ss:$16 sps:$4 sm:$0xff]  }
 0x385   : > { %3348 = vmatprep.subr.bf16.mxu1 %v4942_v56  ;;  %v5015_v56 = vld [vmem:[%s6647_s7 + $0x780] ss:$16 sps:$4 sm:$0xff]  }
 0x387   : > { %3185 = vmatpush1.bf16.msra.mxu0 %v4937_v58  ;;  %v5023_v58 = vld [vmem:[%s6647_s7 + $0x7a4] ss:$16 sps:$4 sm:$0xff]  }
 0x388   : > { %3349 = vmatpush1.bf16.msra.mxu1 %v4940_v59  ;;  %3195 = vmatprep.subr.bf16.mxu0 %v4945_v60  ;;  %v5026_v59 = vld [vmem:[%s6647_s7 + $0x7ac] ss:$16 sps:$4 sm:$0xff]   ;;  %v5024_v60 = vld [vmem:[%s6647_s7 + $0x7a8] ss:$16 sps:$4 sm:$0xff]  }
 0x389   : > { %3359 = vmatprep.subr.bf16.mxu1 %v4948_v61  ;;  %v5029_v61 = vld [vmem:[%s6647_s7 + $0x7c4] ss:$16 sps:$4 sm:$0xff]  }
 0x38a   : > { %3187 = vmatmul.mubr.bf16.vlgmr.msra.gmra.mrb[4].mxu0 %v1510_v63 }
 0x38b   : > { %3351 = vmatmul.mubr.bf16.vlgmr.msra.gmra.mrb[20].mxu1 %v1510_v63  ;;  %3196 = vmatpush1.bf16.msra.mxu0 %v4943_v62  ;;  %v5027_v62 = vld [vmem:[%s6647_s7 + $0x7c0] ss:$16 sps:$4 sm:$0xff]   ;;  %v5030_v63 = vld [vmem:[%s6647_s7 + $0x7c8] ss:$16 sps:$4 sm:$0xff]  }
 0x38c   : > { %3227 = vmatprep.mubr.bf16.mxu0 %v1513_v4  ;;  %3360 = vmatpush1.bf16.msra.mxu1 %v4946_v0  ;;  %v5035_v0 = vld [vmem:[%s6647_s7 + $0x7e4] ss:$16 sps:$4 sm:$0xff]  }
 0x38d   : > { %3391 = vmatprep.mubr.bf16.mxu1 %v1513_v4  ;;  %3197 = vmatprep.subr.bf16.mxu0 %v4951_v2  ;;  %v1492_v2 = vsub.s32 6, %v5688_v35  ;;  %v5038_v4 = vld [vmem:[%s6647_s7 + $0x7ec] ss:$16 sps:$4 sm:$0xff]   ;;  %v5132_v35 = vld [vmem:[%s6649_s9 + $0x1f0] ss:$8 sps:$4 sm:$0xff]  }
 0x38e   : > { %3361 = vmatprep.subr.bf16.mxu1 %v4954_v5  ;;  %v5033_v5 = vld [vmem:[%s6647_s7 + $0x7e0] ss:$16 sps:$4 sm:$0xff]  }
 0x38f   : > { %3198 = vmatpush1.bf16.msra.mxu0 %v4949_v7  ;;  %v5036_v7 = vld [vmem:[%s6647_s7 + $0x7e8] ss:$16 sps:$4 sm:$0xff]  }
 0x390   : > { %3362 = vmatpush1.bf16.msra.mxu1 %v4952_v8  ;;  %3199 = vmatprep.subr.bf16.mxu0 %v4957_v9  ;;  %v1493_v8 = vrot.slane %v5770_v33, %v1492_v2  ;;  %v5041_v9 = vld [vmem:[%s6649_s9 + $0x4] ss:$8 sps:$4 sm:$0xff]   ;;  %v5042_v33 = vld [vmem:[%s6649_s9 + $0x10] ss:$8 sps:$4 sm:$0xff]  }
 0x391   : > { %3363 = vmatprep.subr.bf16.mxu1 %v4960_v45  ;;  %v5039_v45 = vld [vmem:[%s6649_s9] ss:$8 sps:$4 sm:$0xff]  }
 0x393   : > { %3200 = vmatpush1.bf16.msra.mxu0 %v4955_v10  ;;  %v1512_v10 = vpack.c.bf16 %v1493_v8, %v1493_v8 }
 0x394   : > { %3364 = vmatpush1.bf16.msra.mxu1 %v4958_v11  ;;  %3201 = vmatprep.subr.bf16.mxu0 %v4963_v47  ;;  %v5044_v11 = vld [vmem:[%s6649_s9 + $0x14] ss:$8 sps:$4 sm:$0xff]   ;;  %v5047_v47 = vld [vmem:[%s6649_s9 + $0x24] ss:$8 sps:$4 sm:$0xff]  }
 0x395   : > { %3365 = vmatprep.subr.bf16.mxu1 %v4966_v12  ;;  %v5045_v12 = vld [vmem:[%s6649_s9 + $0x20] ss:$8 sps:$4 sm:$0xff]  }
 0x397   : > { %3202 = vmatpush1.bf16.msra.mxu0 %v4961_v13  ;;  %v5050_v13 = vld [vmem:[%s6649_s9 + $0x34] ss:$8 sps:$4 sm:$0xff]  }
 0x398   : > { %3366 = vmatpush1.bf16.msra.mxu1 %v4964_v14  ;;  %3203 = vmatprep.subr.bf16.mxu0 %v4969_v15  ;;  %v5048_v14 = vld [vmem:[%s6649_s9 + $0x30] ss:$8 sps:$4 sm:$0xff]   ;;  %v5053_v15 = vld [vmem:[%s6649_s9 + $0x44] ss:$8 sps:$4 sm:$0xff]  }
 0x399   : > { %3367 = vmatprep.subr.bf16.mxu1 %v4972_v16  ;;  %v5051_v16 = vld [vmem:[%s6649_s9 + $0x40] ss:$8 sps:$4 sm:$0xff]  }
 0x39b   : > { %3204 = vmatpush1.bf16.msra.mxu0 %v4967_v17  ;;  %v5056_v17 = vld [vmem:[%s6649_s9 + $0x54] ss:$8 sps:$4 sm:$0xff]  }
 0x39c   : > { %3368 = vmatpush1.bf16.msra.mxu1 %v4970_v18  ;;  %3205 = vmatprep.subr.bf16.mxu0 %v4975_v19  ;;  %v5054_v18 = vld [vmem:[%s6649_s9 + $0x50] ss:$8 sps:$4 sm:$0xff]   ;;  %v5059_v19 = vld [vmem:[%s6649_s9 + $0x64] ss:$8 sps:$4 sm:$0xff]  }
 0x39d   : > { %3369 = vmatprep.subr.bf16.mxu1 %v4978_v20  ;;  %v5057_v20 = vld [vmem:[%s6649_s9 + $0x60] ss:$8 sps:$4 sm:$0xff]  }
 0x39f   : > { %3206 = vmatpush1.bf16.msra.mxu0 %v4973_v21  ;;  %v5062_v21 = vld [vmem:[%s6649_s9 + $0x74] ss:$8 sps:$4 sm:$0xff]  }
 0x3a0   : > { %3370 = vmatpush1.bf16.msra.mxu1 %v4976_v22  ;;  %3207 = vmatprep.subr.bf16.mxu0 %v4981_v23  ;;  %v5060_v22 = vld [vmem:[%s6649_s9 + $0x70] ss:$8 sps:$4 sm:$0xff]   ;;  %v5065_v23 = vld [vmem:[%s6649_s9 + $0x84] ss:$8 sps:$4 sm:$0xff]  }
 0x3a1   : > { %3371 = vmatprep.subr.bf16.mxu1 %v4984_v24  ;;  %v5063_v24 = vld [vmem:[%s6649_s9 + $0x80] ss:$8 sps:$4 sm:$0xff]  }
 0x3a3   : > { %3208 = vmatpush1.bf16.msra.mxu0 %v4979_v25  ;;  %v5068_v25 = vld [vmem:[%s6649_s9 + $0x94] ss:$8 sps:$4 sm:$0xff]  }
 0x3a4   : > { %3372 = vmatpush1.bf16.msra.mxu1 %v4982_v26  ;;  %3209 = vmatprep.subr.bf16.mxu0 %v4987_v27  ;;  %v5066_v26 = vld [vmem:[%s6649_s9 + $0x90] ss:$8 sps:$4 sm:$0xff]   ;;  %v5071_v27 = vld [vmem:[%s6649_s9 + $0xa4] ss:$8 sps:$4 sm:$0xff]  }
 0x3a5   : > { %3373 = vmatprep.subr.bf16.mxu1 %v4990_v28  ;;  %v5069_v28 = vld [vmem:[%s6649_s9 + $0xa0] ss:$8 sps:$4 sm:$0xff]  }
 0x3a7   : > { %3210 = vmatpush1.bf16.msra.mxu0 %v4985_v29  ;;  %v5074_v29 = vld [vmem:[%s6649_s9 + $0xb4] ss:$8 sps:$4 sm:$0xff]  }
 0x3a8   : > { %3374 = vmatpush1.bf16.msra.mxu1 %v4988_v30  ;;  %3211 = vmatprep.subr.bf16.mxu0 %v4993_v34  ;;  %v5072_v30 = vld [vmem:[%s6649_s9 + $0xb0] ss:$8 sps:$4 sm:$0xff]   ;;  %v5077_v34 = vld [vmem:[%s6649_s9 + $0xc4] ss:$8 sps:$4 sm:$0xff]  }
 0x3a9   : > { %3375 = vmatprep.subr.bf16.mxu1 %v4996_v1  ;;  %v5075_v1 = vld [vmem:[%s6649_s9 + $0xc0] ss:$8 sps:$4 sm:$0xff]  }
 0x3ab   : > { %3212 = vmatpush1.bf16.msra.mxu0 %v4991_v3  ;;  %v5080_v3 = vld [vmem:[%s6649_s9 + $0xd4] ss:$8 sps:$4 sm:$0xff]  }
 0x3ac   : > { %3376 = vmatpush1.bf16.msra.mxu1 %v4994_v6  ;;  %3213 = vmatprep.subr.bf16.mxu0 %v4999_v39  ;;  %v5078_v6 = vld [vmem:[%s6649_s9 + $0xd0] ss:$8 sps:$4 sm:$0xff]   ;;  %v5083_v39 = vld [vmem:[%s6649_s9 + $0xe4] ss:$8 sps:$4 sm:$0xff]  }
 0x3ad   : > { %3377 = vmatprep.subr.bf16.mxu1 %v5002_v36  ;;  %v5081_v36 = vld [vmem:[%s6649_s9 + $0xe0] ss:$8 sps:$4 sm:$0xff]  }
 0x3af   : > { %3214 = vmatpush1.bf16.msra.mxu0 %v4997_v37  ;;  %v5086_v37 = vld [vmem:[%s6649_s9 + $0xf4] ss:$8 sps:$4 sm:$0xff]  }
 0x3b0   : > { %3378 = vmatpush1.bf16.msra.mxu1 %v5000_v40  ;;  %3215 = vmatprep.subr.bf16.mxu0 %v5005_v41  ;;  %v5084_v40 = vld [vmem:[%s6649_s9 + $0xf0] ss:$8 sps:$4 sm:$0xff]   ;;  %v5089_v41 = vld [vmem:[%s6649_s9 + $0x104] ss:$8 sps:$4 sm:$0xff]  }
 0x3b1   : > { %3379 = vmatprep.subr.bf16.mxu1 %v5008_v42  ;;  %v5135_v42 = vld [vmem:[%s6651_s11 + $0x40] sm:$0xff]  }
 0x3b3   : > { %3216 = vmatpush1.bf16.msra.mxu0 %v5003_v43  ;;  %v5136_v43 = vld [vmem:[%s6651_s11] sm:$0xff]  }
 0x3b4   : > { %3380 = vmatpush1.bf16.msra.mxu1 %v5006_v44  ;;  %3217 = vmatprep.subr.bf16.mxu0 %v5011_v49  ;;  %v5137_v44 = vld [vmem:[%s6651_s11 + $0x48] sm:$0xff]  }
 0x3b5   : > { %3381 = vmatprep.subr.bf16.mxu1 %v5014_v51  ;;  %v5138_v49 = vld [vmem:[%s6651_s11 + $0x8] sm:$0xff]   ;;  %v5139_v51 = vld [vmem:[%s6651_s11 + $0x50] sm:$0xff]  }
 0x3b7   : > { %3218 = vmatpush1.bf16.msra.mxu0 %v5009_v52  ;;  %v5140_v52 = vld [vmem:[%s6651_s11 + $0x10] sm:$0xff]  }
 0x3b8   : > { %3382 = vmatpush1.bf16.msra.mxu1 %v5012_v53  ;;  %3219 = vmatprep.subr.bf16.mxu0 %v5017_v54  ;;  %v5141_v53 = vld [vmem:[%s6651_s11 + $0x58] sm:$0xff]  }
 0x3b9   : > { %3383 = vmatprep.subr.bf16.mxu1 %v5020_v55  ;;  %v5142_v54 = vld [vmem:[%s6651_s11 + $0x18] sm:$0xff]   ;;  %v5143_v55 = vld [vmem:[%s6651_s11 + $0x60] sm:$0xff]  }
 0x3bb   : > { %3220 = vmatpush1.bf16.msra.mxu0 %v5015_v56  ;;  %v5144_v56 = vld [vmem:[%s6651_s11 + $0x20] sm:$0xff]  }
 0x3bc   : > { %3384 = vmatpush1.bf16.msra.mxu1 %v5018_v57  ;;  %3221 = vmatprep.subr.bf16.mxu0 %v5023_v58  ;;  %v5145_v57 = vld [vmem:[%s6651_s11 + $0x68] sm:$0xff]  }
 0x3bd   : > { %3385 = vmatprep.subr.bf16.mxu1 %v5026_v59  ;;  %v5146_v58 = vld [vmem:[%s6651_s11 + $0x28] sm:$0xff]   ;;  %v6499_v59 = vld [vmem:[%s6648_s8] sm:$0xf] }
 0x3bf   : > { %3222 = vmatpush1.bf16.msra.mxu0 %v5021_v46  ;;  %v3055_v46 = vrot.slane %v6499_v59, %v5719_v50 }
 0x3c0   : > { %3386 = vmatpush1.bf16.msra.mxu1 %v5024_v60  ;;  %3223 = vmatprep.subr.bf16.mxu0 %v5029_v61  ;;  %v3059_v60 = vrot.slane %v6499_v59, %v5767_v31  ;;  %v3067_v61 = vrot.slane %v6499_v59, %v1480_v32  ;;  %v5087_v32 = vld [vmem:[%s6649_s9 + $0x100] ss:$8 sps:$4 sm:$0xff]  }
 0x3c1   : > { %3387 = vmatprep.subr.bf16.mxu1 %v5032_v48 }
 0x3c3   : > { %3224 = vmatpush1.bf16.msra.mxu0 %v5027_v62 }
 0x3c4   : > { %3388 = vmatpush1.bf16.msra.mxu1 %v5030_v63  ;;  %3225 = vmatprep.subr.bf16.mxu0 %v5035_v0 }
 0x3c5   : > { %3389 = vmatprep.subr.bf16.mxu1 %v5038_v4 }
 0x3c7   : > { %3226 = vmatpush1.bf16.msra.mxu0 %v5033_v5 }
 0x3c8   : > { %3390 = vmatpush1.bf16.msra.mxu1 %v5036_v7  ;;  %3804 = vmatprep.subr.bf16.mxu0 %v5041_v9 }
 0x3c9   : > { %4547 = vmatprep.subr.bf16.mxu1 %v5135_v42  ;;  %v3063_v42 = vrot.slane %v6499_v59, %v1476_v38 }
 0x3ca   : > { %3228 = vmatmul.mubr.bf16.vlgmr.msra.gmra.mrb[4].mxu0 %v1512_v10 }
 0x3cb   : > { %3392 = vmatmul.mubr.bf16.vlgmr.msra.gmra.mrb[20].mxu1 %v1512_v10  ;;  %3805 = vmatpush1.bf16.msra.mxu0 %v5039_v45 }
 0x3cc   : > { %3806 = vmatprep.subr.bf16.mxu0 %v5044_v11  ;;  %4548 = vmatpush3.bf16.msra.mxu1 %v5136_v43  ;;  %v5131_v43 = vld [vmem:[%s6649_s9 + $0x1e4] ss:$8 sps:$4 sm:$0xff]  }
 0x3cd   : > { %4549 = vmatprep.subr.bf16.mxu1 %v5137_v44  ;;  %v5129_v44 = vld [vmem:[%s6649_s9 + $0x1e0] ss:$8 sps:$4 sm:$0xff]  }
 0x3cf   : > { %3807 = vmatpush1.bf16.msra.mxu0 %v5042_v33 }
 0x3d0   : > { %3808 = vmatprep.subr.bf16.mxu0 %v5047_v47  ;;  %4550 = vmatpush3.bf16.msra.mxu1 %v5138_v49 }
 0x3d1   : > { %4551 = vmatprep.subr.bf16.mxu1 %v5139_v51  ;;  %v5134_v51 = vld [vmem:[%s6649_s9 + $0x1f4] ss:$8 sps:$4 sm:$0xff]  }
 0x3d3   : > { %3809 = vmatpush1.bf16.msra.mxu0 %v5045_v12 }
 0x3d4   : > { %3810 = vmatprep.subr.bf16.mxu0 %v5050_v13  ;;  %4552 = vmatpush3.bf16.msra.mxu1 %v5140_v52  ;;  %v5092_v13 = vld [vmem:[%s6649_s9 + $0x114] ss:$8 sps:$4 sm:$0xff]  }
 0x3d5   : > { %4553 = vmatprep.subr.bf16.mxu1 %v5141_v53  ;;  %v5147_v53 = vld [vmem:[%s6651_s11 + $0x70] sm:$0xff]  }
 0x3d7   : > { %3811 = vmatpush1.bf16.msra.mxu0 %v5048_v14 }
 0x3d8   : > { %3812 = vmatprep.subr.bf16.mxu0 %v5053_v15  ;;  %4554 = vmatpush3.bf16.msra.mxu1 %v5142_v54  ;;  %v5090_v15 = vld [vmem:[%s6649_s9 + $0x110] ss:$8 sps:$4 sm:$0xff]  }
 0x3d9   : > { %4555 = vmatprep.subr.bf16.mxu1 %v5143_v55  ;;  %v5148_v54 = vld [vmem:[%s6651_s11 + $0x30] sm:$0xff]   ;;  %v5149_v55 = vld [vmem:[%s6651_s11 + $0x78] sm:$0xff]  }
 0x3db   : > { %3813 = vmatpush1.bf16.msra.mxu0 %v5051_v16  ;;  %v5095_v16 = vld [vmem:[%s6649_s9 + $0x124] ss:$8 sps:$4 sm:$0xff]  }
 0x3dc   : > { %3814 = vmatprep.subr.bf16.mxu0 %v5056_v17  ;;  %4556 = vmatpush3.bf16.msra.mxu1 %v5144_v56  ;;  %v5093_v17 = vld [vmem:[%s6649_s9 + $0x120] ss:$8 sps:$4 sm:$0xff]   ;;  %v5150_v56 = vld [vmem:[%s6651_s11 + $0x38] sm:$0xff]  }
 0x3dd   : > { %4557 = vmatprep.subr.bf16.mxu1 %v5145_v57  ;;  %v3472_v57 = vld [vmem:[%s6650_s10] sm:$0x3] }
 0x3de   : > { %v3801_v59 = vrot.slane %v3472_v57, %v5767_v31 }
 0x3df   : > { %3815 = vmatpush1.bf16.msra.mxu0 %v5054_v18  ;;  %v5098_v18 = vld [vmem:[%s6649_s9 + $0x134] ss:$8 sps:$4 sm:$0xff]  }
 0x3e0   : > { %3816 = vmatprep.subr.bf16.mxu0 %v5059_v19  ;;  %4558 = vmatpush3.bf16.msra.mxu1 %v5146_v58  ;;  %v5096_v19 = vld [vmem:[%s6649_s9 + $0x130] ss:$8 sps:$4 sm:$0xff]   ;;  %v3797_v58 = vrot.slane %v3472_v57, %v5719_v50  ;;  %v3922_v50 = vld [vmem:[%s6652_s12] sm:$0x1] }
 0x3e1   : > { %4559 = vmatprep.subr.bf16.mxu1 %v5147_v53 }
 0x3e3   : > { %3817 = vmatpush1.bf16.msra.mxu0 %v5057_v20  ;;  %v5101_v20 = vld [vmem:[%s6649_s9 + $0x144] ss:$8 sps:$4 sm:$0xff]  }
 0x3e4   : > { %3818 = vmatprep.subr.bf16.mxu0 %v5062_v21  ;;  %v5099_v21 = vld [vmem:[%s6649_s9 + $0x140] ss:$8 sps:$4 sm:$0xff]   ;;  %4560 = vmatpush3.bf16.msra.mxu1 %v5148_v54 }
 0x3e5   : > { %4561 = vmatprep.subr.bf16.mxu1 %v5149_v55 }
 0x3e7   : > { %3819 = vmatpush1.bf16.msra.mxu0 %v5060_v22  ;;  %v5104_v22 = vld [vmem:[%s6649_s9 + $0x154] ss:$8 sps:$4 sm:$0xff]  }
 0x3e8   : > { %3820 = vmatprep.subr.bf16.mxu0 %v5065_v23  ;;  %v5102_v23 = vld [vmem:[%s6649_s9 + $0x150] ss:$8 sps:$4 sm:$0xff]   ;;  %4562 = vmatpush3.bf16.msra.mxu1 %v5150_v56 }
 0x3eb   : > { %3821 = vmatpush1.bf16.msra.mxu0 %v5063_v24  ;;  %v5107_v24 = vld [vmem:[%s6649_s9 + $0x164] ss:$8 sps:$4 sm:$0xff]  }
 0x3ec   : > { %3822 = vmatprep.subr.bf16.mxu0 %v5068_v25  ;;  %v5105_v25 = vld [vmem:[%s6649_s9 + $0x160] ss:$8 sps:$4 sm:$0xff]  }
 0x3ef   : > { %3823 = vmatpush1.bf16.msra.mxu0 %v5066_v26  ;;  %v5110_v26 = vld [vmem:[%s6649_s9 + $0x174] ss:$8 sps:$4 sm:$0xff]  }
 0x3f0   : > { %3824 = vmatprep.subr.bf16.mxu0 %v5071_v27  ;;  %v5108_v27 = vld [vmem:[%s6649_s9 + $0x170] ss:$8 sps:$4 sm:$0xff]  }
 0x3f3   : > { %3825 = vmatpush1.bf16.msra.mxu0 %v5069_v28  ;;  %v5113_v28 = vld [vmem:[%s6649_s9 + $0x184] ss:$8 sps:$4 sm:$0xff]  }
 0x3f4   : > { %3826 = vmatprep.subr.bf16.mxu0 %v5074_v29  ;;  %v5111_v29 = vld [vmem:[%s6649_s9 + $0x180] ss:$8 sps:$4 sm:$0xff]  }
 0x3f7   : > { %3827 = vmatpush1.bf16.msra.mxu0 %v5072_v30  ;;  %v5116_v30 = vld [vmem:[%s6649_s9 + $0x194] ss:$8 sps:$4 sm:$0xff]  }
 0x3f8   : > { %3828 = vmatprep.subr.bf16.mxu0 %v5077_v34  ;;  %v5114_v34 = vld [vmem:[%s6649_s9 + $0x190] ss:$8 sps:$4 sm:$0xff]  }
 0x3fb   : > { %3829 = vmatpush1.bf16.msra.mxu0 %v5075_v1  ;;  %v5119_v1 = vld [vmem:[%s6649_s9 + $0x1a4] ss:$8 sps:$4 sm:$0xff]  }
 0x3fc   : > { %3830 = vmatprep.subr.bf16.mxu0 %v5080_v3  ;;  %v5117_v3 = vld [vmem:[%s6649_s9 + $0x1a0] ss:$8 sps:$4 sm:$0xff]  }
 0x3ff   : > { %3831 = vmatpush1.bf16.msra.mxu0 %v5078_v6  ;;  %v5122_v6 = vld [vmem:[%s6649_s9 + $0x1b4] ss:$8 sps:$4 sm:$0xff]  }
 0x400   : > { %3832 = vmatprep.subr.bf16.mxu0 %v5083_v39  ;;  %v5120_v39 = vld [vmem:[%s6649_s9 + $0x1b0] ss:$8 sps:$4 sm:$0xff]  }
 0x403   : > { %3833 = vmatpush1.bf16.msra.mxu0 %v5081_v36  ;;  %v5125_v36 = vld [vmem:[%s6649_s9 + $0x1c4] ss:$8 sps:$4 sm:$0xff]  }
 0x404   : > { %3834 = vmatprep.subr.bf16.mxu0 %v5086_v37  ;;  %v5123_v37 = vld [vmem:[%s6649_s9 + $0x1c0] ss:$8 sps:$4 sm:$0xff]  }
 0x407   : > { %3835 = vmatpush1.bf16.msra.mxu0 %v5084_v40  ;;  %v5128_v40 = vld [vmem:[%s6649_s9 + $0x1d4] ss:$8 sps:$4 sm:$0xff]  }
 0x408   : > { %3845 = vmatprep.subr.bf16.mxu0 %v5089_v41  ;;  %v5126_v41 = vld [vmem:[%s6649_s9 + $0x1d0] ss:$8 sps:$4 sm:$0xff]  }
 0x49d   : > { %v3229_v48 = vpop.f32.mrb[4].mxu0 }
 0x49e   : > { %v4587_v62 = vadd.f32 %v3229_v48, %v3055_v46  ;;  %v6508_v63 = vpop.f32.mrb[20].mxu1  ;;  %v3231_v0 = vpop.f32.mrb[5].mxu0 }
 0x49f   : > { %v4588_v2 = vadd.f32 %v3231_v0, %v3059_v60  ;;  %v3395_v4 = vpop.f32.mrb[21].mxu1  ;;  %v3233_v5 = vpop.f32.mrb[6].mxu0  ;;  %v4589_v49 = vadd.f32 %v6508_v63, %v3063_v42 }
 0x4a0   : > { %v3400_v7 = vmax.f32 %v4587_v62, 0.0  ;;  %v4590_v8 = vadd.f32 %v3395_v4, %v3067_v61  ;;  %v3397_v9 = vpop.f32.mrb[22].mxu1  ;;  %v3234_v45 = vpop.f32.mrb[7].mxu0 }
 0x4a1   : > { %v3401_v10 = vmax.f32 %v4588_v2, 0.0  ;;  %v3398_v11 = vpop.f32.mrb[23].mxu1  ;;  %v3402_v38 = vmax.f32 %v4589_v49, 0.0 }
 0x4a2   : > { %v3403_v33 = vmax.f32 %v4590_v8, 0.0  ;;  %v3404_v12 = vpack.c.bf16 %v3400_v7, %v3400_v7 }
 0x4a3   : > { %v3405_v47 = vpack.c.bf16 %v3401_v10, %v3401_v10  ;;  %v3406_v52 = vpack.c.bf16 %v3402_v38, %v3402_v38 }
 0x4a4   : > { %v3407_v14 = vpack.c.bf16 %v3403_v33, %v3403_v33 }
 0x4a5   : > { %3836 = vmatprep.mubr.bf16.mxu0 %v3405_v47 }
 0x4a6   : > { %3837 = vmatmul.mubr.bf16.vlgmr.msra.gmra.mrb[8].mxu0 %v3404_v12 }
 0x4a7   : > { %3846 = vmatpush1.bf16.msra.mxu0 %v5087_v32  ;;  %3877 = vmatprep.mubr.bf16.mxu0 %v3407_v14 }
 0x4a8   : > { %3847 = vmatprep.subr.bf16.mxu0 %v5092_v13 }
 0x4ab   : > { %3848 = vmatpush1.bf16.msra.mxu0 %v5090_v15 }
 0x4ac   : > { %3849 = vmatprep.subr.bf16.mxu0 %v5095_v16 }
 0x4af   : > { %3850 = vmatpush1.bf16.msra.mxu0 %v5093_v17 }
 0x4b0   : > { %3851 = vmatprep.subr.bf16.mxu0 %v5098_v18 }
 0x4b3   : > { %3852 = vmatpush1.bf16.msra.mxu0 %v5096_v19 }
 0x4b4   : > { %3853 = vmatprep.subr.bf16.mxu0 %v5101_v20 }
 0x4b7   : > { %3854 = vmatpush1.bf16.msra.mxu0 %v5099_v21 }
 0x4b8   : > { %3855 = vmatprep.subr.bf16.mxu0 %v5104_v22 }
 0x4bb   : > { %3856 = vmatpush1.bf16.msra.mxu0 %v5102_v23 }
 0x4bc   : > { %3857 = vmatprep.subr.bf16.mxu0 %v5107_v24 }
 0x4bf   : > { %3858 = vmatpush1.bf16.msra.mxu0 %v5105_v25 }
 0x4c0   : > { %3859 = vmatprep.subr.bf16.mxu0 %v5110_v26 }
 0x4c3   : > { %3860 = vmatpush1.bf16.msra.mxu0 %v5108_v27 }
 0x4c4   : > { %3861 = vmatprep.subr.bf16.mxu0 %v5113_v28 }
 0x4c7   : > { %3862 = vmatpush1.bf16.msra.mxu0 %v5111_v29 }
 0x4c8   : > { %3863 = vmatprep.subr.bf16.mxu0 %v5116_v30 }
 0x4cb   : > { %3864 = vmatpush1.bf16.msra.mxu0 %v5114_v34 }
 0x4cc   : > { %3865 = vmatprep.subr.bf16.mxu0 %v5119_v1 }
 0x4cf   : > { %3866 = vmatpush1.bf16.msra.mxu0 %v5117_v3 }
 0x4d0   : > { %3867 = vmatprep.subr.bf16.mxu0 %v5122_v6 }
 0x4d3   : > { %3868 = vmatpush1.bf16.msra.mxu0 %v5120_v39 }
 0x4d4   : > { %3869 = vmatprep.subr.bf16.mxu0 %v5125_v36 }
 0x4d7   : > { %3870 = vmatpush1.bf16.msra.mxu0 %v5123_v37 }
 0x4d8   : > { %3871 = vmatprep.subr.bf16.mxu0 %v5128_v40 }
 0x4db   : > { %3872 = vmatpush1.bf16.msra.mxu0 %v5126_v41 }
 0x4dc   : > { %3873 = vmatprep.subr.bf16.mxu0 %v5131_v43 }
 0x4df   : > { %3874 = vmatpush1.bf16.msra.mxu0 %v5129_v44 }
 0x4e0   : > { %3875 = vmatprep.subr.bf16.mxu0 %v5134_v51 }
 0x4e3   : > { %3876 = vmatpush1.bf16.msra.mxu0 %v5132_v35 }
 0x4e6   : > { %3878 = vmatmul.mubr.bf16.vlgmr.msra.gmra.mrb[8].mxu0 %v3406_v52 }
 0x5b9   : > { %v3879_v46 = vpop.f32.mrb[8].mxu0 }
 0x5ba   : > { %v4591_v60 = vadd.f32 %v3879_v46, %v3797_v58  ;;  %v3881_v61 = vpop.f32.mrb[9].mxu0 }
 0x5bb   : > { %v4592_v48 = vadd.f32 %v3881_v61, %v3801_v59  ;;  %v3883_v62 = vpop.f32.mrb[10].mxu0 }
 0x5bc   : > { %v3886_v63 = vmax.f32 %v4591_v60, 0.0  ;;  %v3884_v0 = vpop.f32.mrb[11].mxu0 }
 0x5bd   : > { %v3887_v2 = vmax.f32 %v4592_v48, 0.0 }
 0x5be   : > { %v3888_v5 = vpack.c.bf16 %v3886_v63, %v3886_v63 }
 0x5bf   : > { %v3889_v4 = vpack.c.bf16 %v3887_v2, %v3887_v2 }
 0x5c1   : > { %4051 = vmatprep.mubr.bf16.mxu1 %v3889_v4 }
 0x5c2   : > { %4052 = vmatmul.mubr.bf16.vlgmr.msra.gmra.mrb[24].mxu1 %v3888_v5 }
 0x695   : > { %v4563_v7 = vpop.f32.mrb[24].mxu1 }
 0x696   : > { %v4564_v8 = vpop.f32.mrb[25].mxu1 }
 0x697   : > { %v4565_v31 = vadd.f32 %v4564_v8, %v4563_v7  ;;  %v4566_v9 = vpop.f32.mrb[26].mxu1 }
 0x698   : > { %v4567_v45 = vpop.f32.mrb[27].mxu1 }
 0x699   : > { %v4054_v10 = vadd.f32 %v4565_v31, %v3922_v50 }
 0x69b   : > { %4059 = vst [vmem:[%s464_s21] sm:$0x1] %v4054_v10 }
 0x69c PF: > { %s23_s27 = sadd.s32 1, %s5173_s27   ;;  %s6654_s25 = smov %s5169_s26 }
 0x69d   : > { %p20_p5 = scmp.ge.s32.totalorder %s23_s27, 4   ;;  %s6655_s26 = smov %s6657_s28 }
 0x69f   :  { %22 = sbr.rel (!%p20_p5) target bundleno = 2 (0x2), region = 110 }

</bundles_post_ra>
